<compile_context>
chip_gen: v6e
topology: v6e:2x2x1
jax: 0.10.0
libtpu: 0.0.40
codegen_flags: <defaults>
</compile_context>

<pallas_src>
import functools

import jax
import jax.numpy as jnp
from jax import lax
from jax.experimental import pallas as pl
from jax.experimental.pallas import tpu as pltpu


# ----------------------------------------------------------------------------
# Kernel
# ----------------------------------------------------------------------------
def _lstm_model_kernel(
    x_ref,            # (T*Bp, D)            float32, time-major rows: t*Bp + b
    wih1_ref,         # (D, 4*H1)            lstm1 input weights (pre-transposed)
    b1_ref,           # (1, 4*H1)            lstm1 bias_ih + bias_hh
    whcat_ref,        # (H1, 4*H1 + 4*H2)    [whh1 | wih2] concatenated RHS
    whh2_ref,         # (H2, 4*H2)
    b2_ref,           # (1, 4*H2)            lstm2 bias_ih + bias_hh
    wfc1_ref,         # (H2, F1)
    bfc1_ref,         # (1, F1)
    wfc2_ref,         # (F1, 128)            lane-padded fc2 weights
    bfc2_ref,         # (1, 128)             lane-padded fc2 bias
    out_ref,          # (T*Bp, 128)
    xg_ref,           # scratch (T*Bp, 4*H1): precomputed lstm1 input gates
    *,
    seq_len,
    b_pad,
    h1_dim,
    h2_dim,
):
    G1 = 4 * h1_dim
    G2 = 4 * h2_dim

    # ---- Phase 1: hoisted lstm1 input projection (one big MXU pass) --------
    xg_ref[...] = (
        jnp.dot(x_ref[...], wih1_ref[...], preferred_element_type=jnp.float32)
        + b1_ref[...]
    )

    # ---- Hoist loop-invariant weight / bias loads out of the serial loop ---
    w_hcat = whcat_ref[...]          # (H1, G1+G2) — single resident hidden RHS
    w_hh2 = whh2_ref[...]            # (H2, G2)
    b2v = b2_ref[...]                # (1, G2)

    def gates_to_hc(gates, c, H):
        # PyTorch gate order i|f|g|o.  i and f are contiguous, so one sigmoid
        # covers both (fewer EUP pushes / sub-vreg slices on the serial path).
        sig_if = jax.nn.sigmoid(gates[:, : 2 * H])
        i = sig_if[:, :H]
        f = sig_if[:, H:]
        g = jnp.tanh(gates[:, 2 * H : 3 * H])
        o = jax.nn.sigmoid(gates[:, 3 * H :])
        c_new = f * c + i * g
        h_new = o * jnp.tanh(c_new)
        return h_new, c_new

    c1 = jnp.zeros((b_pad, h1_dim), jnp.float32)
    h2 = jnp.zeros((b_pad, h2_dim), jnp.float32)
    c2 = jnp.zeros((b_pad, h2_dim), jnp.float32)
    # z carries h1_{t-1} @ [whh1 | wih2]; zero at t=0 since h1_{-1} = 0.
    z = jnp.zeros((b_pad, G1 + G2), jnp.float32)

    h2_hist = []

    # ---- Phase 2: serial recurrence, fully unrolled (T small and static) ---
    # (If T grows beyond ~16, switch to lax.fori_loop(..., unroll=2-4) with
    #  pl.ds(pl.multiple_of(t*b_pad, 8), b_pad) indexing to bound live ranges.)
    for t in range(seq_len):
        r0 = t * b_pad                                   # static, 8-aligned

        # lstm1: input part precomputed in Phase 1; hidden part came along
        # with the previous step's single h1 dot (z[:, :G1]).
        gates1 = xg_ref[r0 : r0 + b_pad, :] + z[:, :G1]
        h1, c1 = gates_to_hc(gates1, c1, h1_dim)
        # dropout1: identity (eval mode)

        # One dot of the fresh h1 against the concatenated resident RHS:
        #   z[:, G1:]  -> wih2 contribution for gates2 at this step
        #   z[:, :G1]  -> whh1 contribution for gates1 at step t+1
        z = jnp.dot(h1, w_hcat, preferred_element_type=jnp.float32)

        # lstm2: the h2/bias part depends only on the previous step, so the
        # scheduler can overlap it with lstm1's work.
        gates2 = (
            jnp.dot(h2, w_hh2, preferred_element_type=jnp.float32)
            + b2v
            + z[:, G1:]
        )
        h2, c2 = gates_to_hc(gates2, c2, h2_dim)
        # dropout2: identity (eval mode)

        h2_hist.append(h2)                               # kept in registers

    # ---- Phase 3: deferred FC head, batched over all timesteps -------------
    h2_all = jnp.concatenate(h2_hist, axis=0)            # (T*Bp, H2)
    y = (
        jnp.dot(h2_all, wfc1_ref[...], preferred_element_type=jnp.float32)
        + bfc1_ref[...]
    )
    y = jnp.maximum(y, 0.0)                              # ReLU
    out_ref[...] = (
        jnp.dot(y, wfc2_ref[...], preferred_element_type=jnp.float32)
        + bfc2_ref[...]
    )


# ----------------------------------------------------------------------------
# Wrapper (meant to be run under jax.jit so the relayout ops fuse)
# ----------------------------------------------------------------------------
def lstm_micro_expression_forward(x, params):
    """x: (B, T, D) float32 -> (B, T, 2) float32 (batch_first, like PyTorch)."""
    wih1, whh1, b1, wih2, whh2, b2, wfc1, bfc1, wfc2, bfc2 = params
    B, T, D = x.shape
    H1 = whh1.shape[0]
    H2 = whh2.shape[0]
    n_out = wfc2.shape[1]

    # Pad batch to a full 8-sublane vreg occupancy.
    Bp = max(8, ((B + 7) // 8) * 8)

    # Time-major, batch-padded, flattened to a lane-major 2-D slab.
    x_t = jnp.transpose(x, (1, 0, 2))                    # (T, B, D)
    x_t = jnp.pad(x_t, ((0, 0), (0, Bp - B), (0, 0)))    # (T, Bp, D)
    x_flat = x_t.reshape(T * Bp, D).astype(jnp.float32)  # row = t*Bp + b

    # Single resident hidden-side RHS for the serial loop: [whh1 | wih2].
    w_hcat = jnp.concatenate([whh1, wih2], axis=1)       # (H1, 4*H1 + 4*H2)

    # Lane-pad fc2 so the kernel's single output store is full-width/unmasked.
    # (Revisit only if batch scales to ~1k on v5e, where padded writeback
    #  could dominate HBM traffic.)
    NP = 128
    wfc2p = jnp.pad(wfc2, ((0, 0), (0, NP - n_out)))
    bfc2p = jnp.pad(bfc2, ((0, 0), (0, NP - n_out)))

    kernel = functools.partial(
        _lstm_model_kernel, seq_len=T, b_pad=Bp, h1_dim=H1, h2_dim=H2)
    vmem = pl.BlockSpec(memory_space=pltpu.MemorySpace.VMEM)

    out_flat = pl.pallas_call(
        kernel,
        out_shape=jax.ShapeDtypeStruct((T * Bp, NP), jnp.float32),
        in_specs=[vmem] * 10,
        out_specs=vmem,
        scratch_shapes=[
            pltpu.VMEM((T * Bp, 4 * H1), jnp.float32),   # hoisted input gates
        ],
    )(x_flat, wih1, b1, w_hcat, whh2, b2, wfc1, bfc1, wfc2p, bfc2p)

    out = out_flat.reshape(T, Bp, NP)[:, :B, :n_out]     # strip padding
    return jnp.transpose(out, (1, 0, 2))                 # (B, T, 2)


# ----------------------------------------------------------------------------
# Deterministic parameter initialization (same shapes as the PyTorch module)
# ----------------------------------------------------------------------------
def init_params(key, input_size, h1=64, h2=32, fc1=16, n_out=2):
    keys = jax.random.split(key, 12)

    def unif(k, shape, bound):
        return jax.random.uniform(k, shape, jnp.float32, -bound, bound)

    k1 = 1.0 / jnp.sqrt(h1)
    k2 = 1.0 / jnp.sqrt(h2)

    # LSTM1: PyTorch weight_ih (4*H1, D), weight_hh (4*H1, H1) -> pre-transposed
    wih1 = unif(keys[0], (input_size, 4 * h1), k1)
    whh1 = unif(keys[1], (h1, 4 * h1), k1)
    b1 = unif(keys[2], (1, 4 * h1), k1) + unif(keys[3], (1, 4 * h1), k1)

    # LSTM2
    wih2 = unif(keys[4], (h1, 4 * h2), k2)
    whh2 = unif(keys[5], (h2, 4 * h2), k2)
    b2 = unif(keys[6], (1, 4 * h2), k2) + unif(keys[7], (1, 4 * h2), k2)

    # fc1: Linear(32, 16)
    kf1 = 1.0 / jnp.sqrt(h2)
    wfc1 = unif(keys[8], (h2, fc1), kf1)
    bfc1 = unif(keys[9], (1, fc1), kf1)

    # fc2: Linear(16, 2)
    kf2 = 1.0 / jnp.sqrt(fc1)
    wfc2 = unif(keys[10], (fc1, n_out), kf2)
    bfc2 = unif(keys[11], (1, n_out), kf2)

    return (wih1, whh1, b1, wih2, whh2, b2, wfc1, bfc1, wfc2, bfc2)


# ----------------------------------------------------------------------------
# Pure-JAX reference (numerical sanity check)
# ----------------------------------------------------------------------------
def reference_forward(x, params):
    wih1, whh1, b1, wih2, whh2, b2, wfc1, bfc1, wfc2, bfc2 = params
    B, T, D = x.shape
    H1, H2 = whh1.shape[0], whh2.shape[0]

    def cell(x_t, h, c, wih, whh, b, H):
        g = x_t @ wih + h @ whh + b
        i = jax.nn.sigmoid(g[:, :H])
        f = jax.nn.sigmoid(g[:, H:2 * H])
        gg = jnp.tanh(g[:, 2 * H:3 * H])
        o = jax.nn.sigmoid(g[:, 3 * H:])
        c = f * c + i * gg
        return o * jnp.tanh(c), c

    def scan_step(carry, x_t):
        h1, c1, h2, c2 = carry
        h1, c1 = cell(x_t, h1, c1, wih1, whh1, b1, H1)
        h2, c2 = cell(h1, h2, c2, wih2, whh2, b2, H2)
        y = jnp.maximum(h2 @ wfc1 + bfc1, 0.0) @ wfc2 + bfc2
        return (h1, c1, h2, c2), y

    init = (jnp.zeros((B, H1)), jnp.zeros((B, H1)),
            jnp.zeros((B, H2)), jnp.zeros((B, H2)))
    _, ys = lax.scan(scan_step, init, jnp.transpose(x, (1, 0, 2)))
    return jnp.transpose(ys, (1, 0, 2))


if __name__ == "__main__":
    B, T, D = 2, 8, 16   # batch=2, seq=8, input_size=16

    key = jax.random.PRNGKey(0)
    kx, kp = jax.random.split(key)
    x = jax.random.normal(kx, (B, T, D), jnp.float32)
    params = init_params(kp, D)

    # jit the whole forward: relayout + pallas kernel + un-relayout become one
    # executable (eliminates per-op dispatch overhead around the tiny kernel).
    forward = jax.jit(lstm_micro_expression_forward)

    out = forward(x, params)
    out = jax.block_until_ready(out)

    assert out.shape == (B, T, 2), out.shape
    assert jnp.all(jnp.isfinite(out))

    ref = reference_forward(x, params)
    assert jnp.allclose(out, ref, rtol=1e-2, atol=1e-2), (
        float(jnp.max(jnp.abs(out - ref))))

    print("KERNEL_OK")
</pallas_src>

<mosaic_0001>
module attributes {stable_mosaic.version = 11 : i64} {
  func.func @_lstm_model_kernel(%arg0: memref<64x16xf32, #tpu.memory_space<vmem>>, %arg1: memref<16x256xf32, #tpu.memory_space<vmem>>, %arg2: memref<1x256xf32, #tpu.memory_space<vmem>>, %arg3: memref<64x384xf32, #tpu.memory_space<vmem>>, %arg4: memref<32x128xf32, #tpu.memory_space<vmem>>, %arg5: memref<1x128xf32, #tpu.memory_space<vmem>>, %arg6: memref<32x16xf32, #tpu.memory_space<vmem>>, %arg7: memref<1x16xf32, #tpu.memory_space<vmem>>, %arg8: memref<16x128xf32, #tpu.memory_space<vmem>>, %arg9: memref<1x128xf32, #tpu.memory_space<vmem>>, %arg10: memref<64x128xf32, #tpu.memory_space<vmem>>, %arg11: memref<64x256xf32, #tpu.memory_space<vmem>>) attributes {dimension_semantics = [], scalar_prefetch = 0 : i64, scratch_operands = 1 : i64, tpu.core_type = #tpu.core_type<tc>} {
    %c0 = arith.constant 0 : index
    %c0_0 = arith.constant 0 : index
    %0 = vector.load %arg0[%c0, %c0_0] : memref<64x16xf32, #tpu.memory_space<vmem>>, vector<64x16xf32>
    %c0_1 = arith.constant 0 : index
    %c0_2 = arith.constant 0 : index
    %1 = vector.load %arg1[%c0_1, %c0_2] : memref<16x256xf32, #tpu.memory_space<vmem>>, vector<16x256xf32>
    %cst = arith.constant dense<0.000000e+00> : vector<64x256xf32>
    %2 = tpu.matmul %0, %1, %cst {dimension_numbers = #tpu.dot_dimension_numbers<[1], [0], [0], [1], [0, 0, 1, 1], [], []>} : vector<64x16xf32>, vector<16x256xf32>, vector<64x256xf32> -> vector<64x256xf32>
    %c0_3 = arith.constant 0 : index
    %c0_4 = arith.constant 0 : index
    %3 = vector.load %arg2[%c0_3, %c0_4] : memref<1x256xf32, #tpu.memory_space<vmem>>, vector<1x256xf32>
    %4 = vector.broadcast %3 : vector<1x256xf32> to vector<64x256xf32>
    %5 = arith.addf %2, %4 : vector<64x256xf32>
    %c0_5 = arith.constant 0 : index
    %c0_6 = arith.constant 0 : index
    %6 = vector.load %arg11[%c0_5, %c0_6] : memref<64x256xf32, #tpu.memory_space<vmem>>, vector<64x256xf32>
    tpu.vector_store %arg11[%c0_5, %c0_6], %5 {strides = array<i32>} : memref<64x256xf32, #tpu.memory_space<vmem>>, vector<64x256xf32>,
    %c0_7 = arith.constant 0 : index
    %c0_8 = arith.constant 0 : index
    %7 = vector.load %arg3[%c0_7, %c0_8] : memref<64x384xf32, #tpu.memory_space<vmem>>, vector<64x384xf32>
    %c0_9 = arith.constant 0 : index
    %c0_10 = arith.constant 0 : index
    %8 = vector.load %arg4[%c0_9, %c0_10] : memref<32x128xf32, #tpu.memory_space<vmem>>, vector<32x128xf32>
    %c0_11 = arith.constant 0 : index
    %c0_12 = arith.constant 0 : index
    %9 = vector.load %arg5[%c0_11, %c0_12] : memref<1x128xf32, #tpu.memory_space<vmem>>, vector<1x128xf32>
    %cst_13 = arith.constant 0.000000e+00 : f32
    %10 = vector.broadcast %cst_13 : f32 to vector<8x64xf32>
    %cst_14 = arith.constant 0.000000e+00 : f32
    %11 = vector.broadcast %cst_14 : f32 to vector<8x32xf32>
    %cst_15 = arith.constant 0.000000e+00 : f32
    %12 = vector.broadcast %cst_15 : f32 to vector<8x32xf32>
    %cst_16 = arith.constant 0.000000e+00 : f32
    %13 = vector.broadcast %cst_16 : f32 to vector<8x384xf32>
    %c0_17 = arith.constant 0 : index
    %c0_18 = arith.constant 0 : index
    %14 = vector.load %arg11[%c0_17, %c0_18] : memref<64x256xf32, #tpu.memory_space<vmem>>, vector<8x256xf32>
    %15 = vector.extract_strided_slice %13 {offsets = [0, 0], sizes = [8, 256], strides = [1, 1]} : vector<8x384xf32> to vector<8x256xf32>
    %16 = arith.addf %14, %15 : vector<8x256xf32>
    %17 = vector.extract_strided_slice %16 {offsets = [0, 0], sizes = [8, 128], strides = [1, 1]} : vector<8x256xf32> to vector<8x128xf32>
    %18 = arith.negf %17 : vector<8x128xf32>
    %19 = math.exp %18 : vector<8x128xf32>
    %cst_19 = arith.constant 1.000000e+00 : f32
    %20 = vector.broadcast %cst_19 : f32 to vector<8x128xf32>
    %21 = arith.addf %20, %19 : vector<8x128xf32>
    %22 = arith.divf %20, %21 : vector<8x128xf32>
    %23 = vector.extract_strided_slice %22 {offsets = [0, 0], sizes = [8, 64], strides = [1, 1]} : vector<8x128xf32> to vector<8x64xf32>
    %24 = vector.extract_strided_slice %22 {offsets = [0, 64], sizes = [8, 64], strides = [1, 1]} : vector<8x128xf32> to vector<8x64xf32>
    %25 = vector.extract_strided_slice %16 {offsets = [0, 128], sizes = [8, 64], strides = [1, 1]} : vector<8x256xf32> to vector<8x64xf32>
    %26 = math.tanh %25 : vector<8x64xf32>
    %27 = vector.extract_strided_slice %16 {offsets = [0, 192], sizes = [8, 64], strides = [1, 1]} : vector<8x256xf32> to vector<8x64xf32>
    %28 = arith.negf %27 : vector<8x64xf32>
    %29 = math.exp %28 : vector<8x64xf32>
    %cst_20 = arith.constant 1.000000e+00 : f32
    %30 = vector.broadcast %cst_20 : f32 to vector<8x64xf32>
    %31 = arith.addf %30, %29 : vector<8x64xf32>
    %32 = arith.divf %30, %31 : vector<8x64xf32>
    %33 = arith.mulf %24, %10 : vector<8x64xf32>
    %34 = arith.mulf %23, %26 : vector<8x64xf32>
    %35 = arith.addf %33, %34 : vector<8x64xf32>
    %36 = math.tanh %35 : vector<8x64xf32>
    %37 = arith.mulf %32, %36 : vector<8x64xf32>
    %cst_21 = arith.constant dense<0.000000e+00> : vector<8x384xf32>
    %38 = tpu.matmul %37, %7, %cst_21 {dimension_numbers = #tpu.dot_dimension_numbers<[1], [0], [0], [1], [0, 0, 1, 1], [], []>} : vector<8x64xf32>, vector<64x384xf32>, vector<8x384xf32> -> vector<8x384xf32>
    %cst_22 = arith.constant dense<0.000000e+00> : vector<8x128xf32>
    %39 = tpu.matmul %11, %8, %cst_22 {dimension_numbers = #tpu.dot_dimension_numbers<[1], [0], [0], [1], [0, 0, 1, 1], [], []>} : vector<8x32xf32>, vector<32x128xf32>, vector<8x128xf32> -> vector<8x128xf32>
    %40 = vector.broadcast %9 : vector<1x128xf32> to vector<8x128xf32>
    %41 = arith.addf %39, %40 : vector<8x128xf32>
    %42 = vector.extract_strided_slice %38 {offsets = [0, 256], sizes = [8, 128], strides = [1, 1]} : vector<8x384xf32> to vector<8x128xf32>
    %43 = arith.addf %41, %42 : vector<8x128xf32>
    %44 = vector.extract_strided_slice %43 {offsets = [0, 0], sizes = [8, 64], strides = [1, 1]} : vector<8x128xf32> to vector<8x64xf32>
    %45 = arith.negf %44 : vector<8x64xf32>
    %46 = math.exp %45 : vector<8x64xf32>
    %cst_23 = arith.constant 1.000000e+00 : f32
    %47 = vector.broadcast %cst_23 : f32 to vector<8x64xf32>
    %48 = arith.addf %47, %46 : vector<8x64xf32>
    %49 = arith.divf %47, %48 : vector<8x64xf32>
    %50 = vector.extract_strided_slice %49 {offsets = [0, 0], sizes = [8, 32], strides = [1, 1]} : vector<8x64xf32> to vector<8x32xf32>
    %51 = vector.extract_strided_slice %49 {offsets = [0, 32], sizes = [8, 32], strides = [1, 1]} : vector<8x64xf32> to vector<8x32xf32>
    %52 = vector.extract_strided_slice %43 {offsets = [0, 64], sizes = [8, 32], strides = [1, 1]} : vector<8x128xf32> to vector<8x32xf32>
    %53 = math.tanh %52 : vector<8x32xf32>
    %54 = vector.extract_strided_slice %43 {offsets = [0, 96], sizes = [8, 32], strides = [1, 1]} : vector<8x128xf32> to vector<8x32xf32>
    %55 = arith.negf %54 : vector<8x32xf32>
    %56 = math.exp %55 : vector<8x32xf32>
    %cst_24 = arith.constant 1.000000e+00 : f32
    %57 = vector.broadcast %cst_24 : f32 to vector<8x32xf32>
    %58 = arith.addf %57, %56 : vector<8x32xf32>
    %59 = arith.divf %57, %58 : vector<8x32xf32>
    %60 = arith.mulf %51, %12 : vector<8x32xf32>
    %61 = arith.mulf %50, %53 : vector<8x32xf32>
    %62 = arith.addf %60, %61 : vector<8x32xf32>
    %63 = math.tanh %62 : vector<8x32xf32>
    %64 = arith.mulf %59, %63 : vector<8x32xf32>
    %c8 = arith.constant 8 : index
    %c0_25 = arith.constant 0 : index
    %65 = vector.load %arg11[%c8, %c0_25] : memref<64x256xf32, #tpu.memory_space<vmem>>, vector<8x256xf32>
    %66 = vector.extract_strided_slice %38 {offsets = [0, 0], sizes = [8, 256], strides = [1, 1]} : vector<8x384xf32> to vector<8x256xf32>
    %67 = arith.addf %65, %66 : vector<8x256xf32>
    %68 = vector.extract_strided_slice %67 {offsets = [0, 0], sizes = [8, 128], strides = [1, 1]} : vector<8x256xf32> to vector<8x128xf32>
    %69 = arith.negf %68 : vector<8x128xf32>
    %70 = math.exp %69 : vector<8x128xf32>
    %cst_26 = arith.constant 1.000000e+00 : f32
    %71 = vector.broadcast %cst_26 : f32 to vector<8x128xf32>
    %72 = arith.addf %71, %70 : vector<8x128xf32>
    %73 = arith.divf %71, %72 : vector<8x128xf32>
    %74 = vector.extract_strided_slice %73 {offsets = [0, 0], sizes = [8, 64], strides = [1, 1]} : vector<8x128xf32> to vector<8x64xf32>
    %75 = vector.extract_strided_slice %73 {offsets = [0, 64], sizes = [8, 64], strides = [1, 1]} : vector<8x128xf32> to vector<8x64xf32>
    %76 = vector.extract_strided_slice %67 {offsets = [0, 128], sizes = [8, 64], strides = [1, 1]} : vector<8x256xf32> to vector<8x64xf32>
    %77 = math.tanh %76 : vector<8x64xf32>
    %78 = vector.extract_strided_slice %67 {offsets = [0, 192], sizes = [8, 64], strides = [1, 1]} : vector<8x256xf32> to vector<8x64xf32>
    %79 = arith.negf %78 : vector<8x64xf32>
    %80 = math.exp %79 : vector<8x64xf32>
    %cst_27 = arith.constant 1.000000e+00 : f32
    %81 = vector.broadcast %cst_27 : f32 to vector<8x64xf32>
    %82 = arith.addf %81, %80 : vector<8x64xf32>
    %83 = arith.divf %81, %82 : vector<8x64xf32>
    %84 = arith.mulf %75, %35 : vector<8x64xf32>
    %85 = arith.mulf %74, %77 : vector<8x64xf32>
    %86 = arith.addf %84, %85 : vector<8x64xf32>
    %87 = math.tanh %86 : vector<8x64xf32>
    %88 = arith.mulf %83, %87 : vector<8x64xf32>
    %cst_28 = arith.constant dense<0.000000e+00> : vector<8x384xf32>
    %89 = tpu.matmul %88, %7, %cst_28 {dimension_numbers = #tpu.dot_dimension_numbers<[1], [0], [0], [1], [0, 0, 1, 1], [], []>} : vector<8x64xf32>, vector<64x384xf32>, vector<8x384xf32> -> vector<8x384xf32>
    %cst_29 = arith.constant dense<0.000000e+00> : vector<8x128xf32>
    %90 = tpu.matmul %64, %8, %cst_29 {dimension_numbers = #tpu.dot_dimension_numbers<[1], [0], [0], [1], [0, 0, 1, 1], [], []>} : vector<8x32xf32>, vector<32x128xf32>, vector<8x128xf32> -> vector<8x128xf32>
    %91 = vector.broadcast %9 : vector<1x128xf32> to vector<8x128xf32>
    %92 = arith.addf %90, %91 : vector<8x128xf32>
    %93 = vector.extract_strided_slice %89 {offsets = [0, 256], sizes = [8, 128], strides = [1, 1]} : vector<8x384xf32> to vector<8x128xf32>
    %94 = arith.addf %92, %93 : vector<8x128xf32>
    %95 = vector.extract_strided_slice %94 {offsets = [0, 0], sizes = [8, 64], strides = [1, 1]} : vector<8x128xf32> to vector<8x64xf32>
    %96 = arith.negf %95 : vector<8x64xf32>
    %97 = math.exp %96 : vector<8x64xf32>
    %cst_30 = arith.constant 1.000000e+00 : f32
    %98 = vector.broadcast %cst_30 : f32 to vector<8x64xf32>
    %99 = arith.addf %98, %97 : vector<8x64xf32>
    %100 = arith.divf %98, %99 : vector<8x64xf32>
    %101 = vector.extract_strided_slice %100 {offsets = [0, 0], sizes = [8, 32], strides = [1, 1]} : vector<8x64xf32> to vector<8x32xf32>
    %102 = vector.extract_strided_slice %100 {offsets = [0, 32], sizes = [8, 32], strides = [1, 1]} : vector<8x64xf32> to vector<8x32xf32>
    %103 = vector.extract_strided_slice %94 {offsets = [0, 64], sizes = [8, 32], strides = [1, 1]} : vector<8x128xf32> to vector<8x32xf32>
    %104 = math.tanh %103 : vector<8x32xf32>
    %105 = vector.extract_strided_slice %94 {offsets = [0, 96], sizes = [8, 32], strides = [1, 1]} : vector<8x128xf32> to vector<8x32xf32>
    %106 = arith.negf %105 : vector<8x32xf32>
    %107 = math.exp %106 : vector<8x32xf32>
    %cst_31 = arith.constant 1.000000e+00 : f32
    %108 = vector.broadcast %cst_31 : f32 to vector<8x32xf32>
    %109 = arith.addf %108, %107 : vector<8x32xf32>
    %110 = arith.divf %108, %109 : vector<8x32xf32>
    %111 = arith.mulf %102, %62 : vector<8x32xf32>
    %112 = arith.mulf %101, %104 : vector<8x32xf32>
    %113 = arith.addf %111, %112 : vector<8x32xf32>
    %114 = math.tanh %113 : vector<8x32xf32>
    %115 = arith.mulf %110, %114 : vector<8x32xf32>
    %c16 = arith.constant 16 : index
    %c0_32 = arith.constant 0 : index
    %116 = vector.load %arg11[%c16, %c0_32] : memref<64x256xf32, #tpu.memory_space<vmem>>, vector<8x256xf32>
    %117 = vector.extract_strided_slice %89 {offsets = [0, 0], sizes = [8, 256], strides = [1, 1]} : vector<8x384xf32> to vector<8x256xf32>
    %118 = arith.addf %116, %117 : vector<8x256xf32>
    %119 = vector.extract_strided_slice %118 {offsets = [0, 0], sizes = [8, 128], strides = [1, 1]} : vector<8x256xf32> to vector<8x128xf32>
    %120 = arith.negf %119 : vector<8x128xf32>
    %121 = math.exp %120 : vector<8x128xf32>
    %cst_33 = arith.constant 1.000000e+00 : f32
    %122 = vector.broadcast %cst_33 : f32 to vector<8x128xf32>
    %123 = arith.addf %122, %121 : vector<8x128xf32>
    %124 = arith.divf %122, %123 : vector<8x128xf32>
    %125 = vector.extract_strided_slice %124 {offsets = [0, 0], sizes = [8, 64], strides = [1, 1]} : vector<8x128xf32> to vector<8x64xf32>
    %126 = vector.extract_strided_slice %124 {offsets = [0, 64], sizes = [8, 64], strides = [1, 1]} : vector<8x128xf32> to vector<8x64xf32>
    %127 = vector.extract_strided_slice %118 {offsets = [0, 128], sizes = [8, 64], strides = [1, 1]} : vector<8x256xf32> to vector<8x64xf32>
    %128 = math.tanh %127 : vector<8x64xf32>
    %129 = vector.extract_strided_slice %118 {offsets = [0, 192], sizes = [8, 64], strides = [1, 1]} : vector<8x256xf32> to vector<8x64xf32>
    %130 = arith.negf %129 : vector<8x64xf32>
    %131 = math.exp %130 : vector<8x64xf32>
    %cst_34 = arith.constant 1.000000e+00 : f32
    %132 = vector.broadcast %cst_34 : f32 to vector<8x64xf32>
    %133 = arith.addf %132, %131 : vector<8x64xf32>
    %134 = arith.divf %132, %133 : vector<8x64xf32>
    %135 = arith.mulf %126, %86 : vector<8x64xf32>
    %136 = arith.mulf %125, %128 : vector<8x64xf32>
    %137 = arith.addf %135, %136 : vector<8x64xf32>
    %138 = math.tanh %137 : vector<8x64xf32>
    %139 = arith.mulf %134, %138 : vector<8x64xf32>
    %cst_35 = arith.constant dense<0.000000e+00> : vector<8x384xf32>
    %140 = tpu.matmul %139, %7, %cst_35 {dimension_numbers = #tpu.dot_dimension_numbers<[1], [0], [0], [1], [0, 0, 1, 1], [], []>} : vector<8x64xf32>, vector<64x384xf32>, vector<8x384xf32> -> vector<8x384xf32>
    %cst_36 = arith.constant dense<0.000000e+00> : vector<8x128xf32>
    %141 = tpu.matmul %115, %8, %cst_36 {dimension_numbers = #tpu.dot_dimension_numbers<[1], [0], [0], [1], [0, 0, 1, 1], [], []>} : vector<8x32xf32>, vector<32x128xf32>, vector<8x128xf32> -> vector<8x128xf32>
    %142 = vector.broadcast %9 : vector<1x128xf32> to vector<8x128xf32>
    %143 = arith.addf %141, %142 : vector<8x128xf32>
    %144 = vector.extract_strided_slice %140 {offsets = [0, 256], sizes = [8, 128], strides = [1, 1]} : vector<8x384xf32> to vector<8x128xf32>
    %145 = arith.addf %143, %144 : vector<8x128xf32>
    %146 = vector.extract_strided_slice %145 {offsets = [0, 0], sizes = [8, 64], strides = [1, 1]} : vector<8x128xf32> to vector<8x64xf32>
    %147 = arith.negf %146 : vector<8x64xf32>
    %148 = math.exp %147 : vector<8x64xf32>
    %cst_37 = arith.constant 1.000000e+00 : f32
    %149 = vector.broadcast %cst_37 : f32 to vector<8x64xf32>
    %150 = arith.addf %149, %148 : vector<8x64xf32>
    %151 = arith.divf %149, %150 : vector<8x64xf32>
    %152 = vector.extract_strided_slice %151 {offsets = [0, 0], sizes = [8, 32], strides = [1, 1]} : vector<8x64xf32> to vector<8x32xf32>
    %153 = vector.extract_strided_slice %151 {offsets = [0, 32], sizes = [8, 32], strides = [1, 1]} : vector<8x64xf32> to vector<8x32xf32>
    %154 = vector.extract_strided_slice %145 {offsets = [0, 64], sizes = [8, 32], strides = [1, 1]} : vector<8x128xf32> to vector<8x32xf32>
    %155 = math.tanh %154 : vector<8x32xf32>
    %156 = vector.extract_strided_slice %145 {offsets = [0, 96], sizes = [8, 32], strides = [1, 1]} : vector<8x128xf32> to vector<8x32xf32>
    %157 = arith.negf %156 : vector<8x32xf32>
    %158 = math.exp %157 : vector<8x32xf32>
    %cst_38 = arith.constant 1.000000e+00 : f32
    %159 = vector.broadcast %cst_38 : f32 to vector<8x32xf32>
    %160 = arith.addf %159, %158 : vector<8x32xf32>
    %161 = arith.divf %159, %160 : vector<8x32xf32>
    %162 = arith.mulf %153, %113 : vector<8x32xf32>
    %163 = arith.mulf %152, %155 : vector<8x32xf32>
    %164 = arith.addf %162, %163 : vector<8x32xf32>
    %165 = math.tanh %164 : vector<8x32xf32>
    %166 = arith.mulf %161, %165 : vector<8x32xf32>
    %c24 = arith.constant 24 : index
    %c0_39 = arith.constant 0 : index
    %167 = vector.load %arg11[%c24, %c0_39] : memref<64x256xf32, #tpu.memory_space<vmem>>, vector<8x256xf32>
    %168 = vector.extract_strided_slice %140 {offsets = [0, 0], sizes = [8, 256], strides = [1, 1]} : vector<8x384xf32> to vector<8x256xf32>
    %169 = arith.addf %167, %168 : vector<8x256xf32>
    %170 = vector.extract_strided_slice %169 {offsets = [0, 0], sizes = [8, 128], strides = [1, 1]} : vector<8x256xf32> to vector<8x128xf32>
    %171 = arith.negf %170 : vector<8x128xf32>
    %172 = math.exp %171 : vector<8x128xf32>
    %cst_40 = arith.constant 1.000000e+00 : f32
    %173 = vector.broadcast %cst_40 : f32 to vector<8x128xf32>
    %174 = arith.addf %173, %172 : vector<8x128xf32>
    %175 = arith.divf %173, %174 : vector<8x128xf32>
    %176 = vector.extract_strided_slice %175 {offsets = [0, 0], sizes = [8, 64], strides = [1, 1]} : vector<8x128xf32> to vector<8x64xf32>
    %177 = vector.extract_strided_slice %175 {offsets = [0, 64], sizes = [8, 64], strides = [1, 1]} : vector<8x128xf32> to vector<8x64xf32>
    %178 = vector.extract_strided_slice %169 {offsets = [0, 128], sizes = [8, 64], strides = [1, 1]} : vector<8x256xf32> to vector<8x64xf32>
    %179 = math.tanh %178 : vector<8x64xf32>
    %180 = vector.extract_strided_slice %169 {offsets = [0, 192], sizes = [8, 64], strides = [1, 1]} : vector<8x256xf32> to vector<8x64xf32>
    %181 = arith.negf %180 : vector<8x64xf32>
    %182 = math.exp %181 : vector<8x64xf32>
    %cst_41 = arith.constant 1.000000e+00 : f32
    %183 = vector.broadcast %cst_41 : f32 to vector<8x64xf32>
    %184 = arith.addf %183, %182 : vector<8x64xf32>
    %185 = arith.divf %183, %184 : vector<8x64xf32>
    %186 = arith.mulf %177, %137 : vector<8x64xf32>
    %187 = arith.mulf %176, %179 : vector<8x64xf32>
    %188 = arith.addf %186, %187 : vector<8x64xf32>
    %189 = math.tanh %188 : vector<8x64xf32>
    %190 = arith.mulf %185, %189 : vector<8x64xf32>
    %cst_42 = arith.constant dense<0.000000e+00> : vector<8x384xf32>
    %191 = tpu.matmul %190, %7, %cst_42 {dimension_numbers = #tpu.dot_dimension_numbers<[1], [0], [0], [1], [0, 0, 1, 1], [], []>} : vector<8x64xf32>, vector<64x384xf32>, vector<8x384xf32> -> vector<8x384xf32>
    %cst_43 = arith.constant dense<0.000000e+00> : vector<8x128xf32>
    %192 = tpu.matmul %166, %8, %cst_43 {dimension_numbers = #tpu.dot_dimension_numbers<[1], [0], [0], [1], [0, 0, 1, 1], [], []>} : vector<8x32xf32>, vector<32x128xf32>, vector<8x128xf32> -> vector<8x128xf32>
    %193 = vector.broadcast %9 : vector<1x128xf32> to vector<8x128xf32>
    %194 = arith.addf %192, %193 : vector<8x128xf32>
    %195 = vector.extract_strided_slice %191 {offsets = [0, 256], sizes = [8, 128], strides = [1, 1]} : vector<8x384xf32> to vector<8x128xf32>
    %196 = arith.addf %194, %195 : vector<8x128xf32>
    %197 = vector.extract_strided_slice %196 {offsets = [0, 0], sizes = [8, 64], strides = [1, 1]} : vector<8x128xf32> to vector<8x64xf32>
    %198 = arith.negf %197 : vector<8x64xf32>
    %199 = math.exp %198 : vector<8x64xf32>
    %cst_44 = arith.constant 1.000000e+00 : f32
    %200 = vector.broadcast %cst_44 : f32 to vector<8x64xf32>
    %201 = arith.addf %200, %199 : vector<8x64xf32>
    %202 = arith.divf %200, %201 : vector<8x64xf32>
    %203 = vector.extract_strided_slice %202 {offsets = [0, 0], sizes = [8, 32], strides = [1, 1]} : vector<8x64xf32> to vector<8x32xf32>
    %204 = vector.extract_strided_slice %202 {offsets = [0, 32], sizes = [8, 32], strides = [1, 1]} : vector<8x64xf32> to vector<8x32xf32>
    %205 = vector.extract_strided_slice %196 {offsets = [0, 64], sizes = [8, 32], strides = [1, 1]} : vector<8x128xf32> to vector<8x32xf32>
    %206 = math.tanh %205 : vector<8x32xf32>
    %207 = vector.extract_strided_slice %196 {offsets = [0, 96], sizes = [8, 32], strides = [1, 1]} : vector<8x128xf32> to vector<8x32xf32>
    %208 = arith.negf %207 : vector<8x32xf32>
    %209 = math.exp %208 : vector<8x32xf32>
    %cst_45 = arith.constant 1.000000e+00 : f32
    %210 = vector.broadcast %cst_45 : f32 to vector<8x32xf32>
    %211 = arith.addf %210, %209 : vector<8x32xf32>
    %212 = arith.divf %210, %211 : vector<8x32xf32>
    %213 = arith.mulf %204, %164 : vector<8x32xf32>
    %214 = arith.mulf %203, %206 : vector<8x32xf32>
    %215 = arith.addf %213, %214 : vector<8x32xf32>
    %216 = math.tanh %215 : vector<8x32xf32>
    %217 = arith.mulf %212, %216 : vector<8x32xf32>
    %c32 = arith.constant 32 : index
    %c0_46 = arith.constant 0 : index
    %218 = vector.load %arg11[%c32, %c0_46] : memref<64x256xf32, #tpu.memory_space<vmem>>, vector<8x256xf32>
    %219 = vector.extract_strided_slice %191 {offsets = [0, 0], sizes = [8, 256], strides = [1, 1]} : vector<8x384xf32> to vector<8x256xf32>
    %220 = arith.addf %218, %219 : vector<8x256xf32>
    %221 = vector.extract_strided_slice %220 {offsets = [0, 0], sizes = [8, 128], strides = [1, 1]} : vector<8x256xf32> to vector<8x128xf32>
    %222 = arith.negf %221 : vector<8x128xf32>
    %223 = math.exp %222 : vector<8x128xf32>
    %cst_47 = arith.constant 1.000000e+00 : f32
    %224 = vector.broadcast %cst_47 : f32 to vector<8x128xf32>
    %225 = arith.addf %224, %223 : vector<8x128xf32>
    %226 = arith.divf %224, %225 : vector<8x128xf32>
    %227 = vector.extract_strided_slice %226 {offsets = [0, 0], sizes = [8, 64], strides = [1, 1]} : vector<8x128xf32> to vector<8x64xf32>
    %228 = vector.extract_strided_slice %226 {offsets = [0, 64], sizes = [8, 64], strides = [1, 1]} : vector<8x128xf32> to vector<8x64xf32>
    %229 = vector.extract_strided_slice %220 {offsets = [0, 128], sizes = [8, 64], strides = [1, 1]} : vector<8x256xf32> to vector<8x64xf32>
    %230 = math.tanh %229 : vector<8x64xf32>
    %231 = vector.extract_strided_slice %220 {offsets = [0, 192], sizes = [8, 64], strides = [1, 1]} : vector<8x256xf32> to vector<8x64xf32>
    %232 = arith.negf %231 : vector<8x64xf32>
    %233 = math.exp %232 : vector<8x64xf32>
    %cst_48 = arith.constant 1.000000e+00 : f32
    %234 = vector.broadcast %cst_48 : f32 to vector<8x64xf32>
    %235 = arith.addf %234, %233 : vector<8x64xf32>
    %236 = arith.divf %234, %235 : vector<8x64xf32>
    %237 = arith.mulf %228, %188 : vector<8x64xf32>
    %238 = arith.mulf %227, %230 : vector<8x64xf32>
    %239 = arith.addf %237, %238 : vector<8x64xf32>
    %240 = math.tanh %239 : vector<8x64xf32>
    %241 = arith.mulf %236, %240 : vector<8x64xf32>
    %cst_49 = arith.constant dense<0.000000e+00> : vector<8x384xf32>
    %242 = tpu.matmul %241, %7, %cst_49 {dimension_numbers = #tpu.dot_dimension_numbers<[1], [0], [0], [1], [0, 0, 1, 1], [], []>} : vector<8x64xf32>, vector<64x384xf32>, vector<8x384xf32> -> vector<8x384xf32>
    %cst_50 = arith.constant dense<0.000000e+00> : vector<8x128xf32>
    %243 = tpu.matmul %217, %8, %cst_50 {dimension_numbers = #tpu.dot_dimension_numbers<[1], [0], [0], [1], [0, 0, 1, 1], [], []>} : vector<8x32xf32>, vector<32x128xf32>, vector<8x128xf32> -> vector<8x128xf32>
    %244 = vector.broadcast %9 : vector<1x128xf32> to vector<8x128xf32>
    %245 = arith.addf %243, %244 : vector<8x128xf32>
    %246 = vector.extract_strided_slice %242 {offsets = [0, 256], sizes = [8, 128], strides = [1, 1]} : vector<8x384xf32> to vector<8x128xf32>
    %247 = arith.addf %245, %246 : vector<8x128xf32>
    %248 = vector.extract_strided_slice %247 {offsets = [0, 0], sizes = [8, 64], strides = [1, 1]} : vector<8x128xf32> to vector<8x64xf32>
    %249 = arith.negf %248 : vector<8x64xf32>
    %250 = math.exp %249 : vector<8x64xf32>
    %cst_51 = arith.constant 1.000000e+00 : f32
    %251 = vector.broadcast %cst_51 : f32 to vector<8x64xf32>
    %252 = arith.addf %251, %250 : vector<8x64xf32>
    %253 = arith.divf %251, %252 : vector<8x64xf32>
    %254 = vector.extract_strided_slice %253 {offsets = [0, 0], sizes = [8, 32], strides = [1, 1]} : vector<8x64xf32> to vector<8x32xf32>
    %255 = vector.extract_strided_slice %253 {offsets = [0, 32], sizes = [8, 32], strides = [1, 1]} : vector<8x64xf32> to vector<8x32xf32>
    %256 = vector.extract_strided_slice %247 {offsets = [0, 64], sizes = [8, 32], strides = [1, 1]} : vector<8x128xf32> to vector<8x32xf32>
    %257 = math.tanh %256 : vector<8x32xf32>
    %258 = vector.extract_strided_slice %247 {offsets = [0, 96], sizes = [8, 32], strides = [1, 1]} : vector<8x128xf32> to vector<8x32xf32>
    %259 = arith.negf %258 : vector<8x32xf32>
    %260 = math.exp %259 : vector<8x32xf32>
    %cst_52 = arith.constant 1.000000e+00 : f32
    %261 = vector.broadcast %cst_52 : f32 to vector<8x32xf32>
    %262 = arith.addf %261, %260 : vector<8x32xf32>
    %263 = arith.divf %261, %262 : vector<8x32xf32>
    %264 = arith.mulf %255, %215 : vector<8x32xf32>
    %265 = arith.mulf %254, %257 : vector<8x32xf32>
    %266 = arith.addf %264, %265 : vector<8x32xf32>
    %267 = math.tanh %266 : vector<8x32xf32>
    %268 = arith.mulf %263, %267 : vector<8x32xf32>
    %c40 = arith.constant 40 : index
    %c0_53 = arith.constant 0 : index
    %269 = vector.load %arg11[%c40, %c0_53] : memref<64x256xf32, #tpu.memory_space<vmem>>, vector<8x256xf32>
    %270 = vector.extract_strided_slice %242 {offsets = [0, 0], sizes = [8, 256], strides = [1, 1]} : vector<8x384xf32> to vector<8x256xf32>
    %271 = arith.addf %269, %270 : vector<8x256xf32>
    %272 = vector.extract_strided_slice %271 {offsets = [0, 0], sizes = [8, 128], strides = [1, 1]} : vector<8x256xf32> to vector<8x128xf32>
    %273 = arith.negf %272 : vector<8x128xf32>
    %274 = math.exp %273 : vector<8x128xf32>
    %cst_54 = arith.constant 1.000000e+00 : f32
    %275 = vector.broadcast %cst_54 : f32 to vector<8x128xf32>
    %276 = arith.addf %275, %274 : vector<8x128xf32>
    %277 = arith.divf %275, %276 : vector<8x128xf32>
    %278 = vector.extract_strided_slice %277 {offsets = [0, 0], sizes = [8, 64], strides = [1, 1]} : vector<8x128xf32> to vector<8x64xf32>
    %279 = vector.extract_strided_slice %277 {offsets = [0, 64], sizes = [8, 64], strides = [1, 1]} : vector<8x128xf32> to vector<8x64xf32>
    %280 = vector.extract_strided_slice %271 {offsets = [0, 128], sizes = [8, 64], strides = [1, 1]} : vector<8x256xf32> to vector<8x64xf32>
    %281 = math.tanh %280 : vector<8x64xf32>
    %282 = vector.extract_strided_slice %271 {offsets = [0, 192], sizes = [8, 64], strides = [1, 1]} : vector<8x256xf32> to vector<8x64xf32>
    %283 = arith.negf %282 : vector<8x64xf32>
    %284 = math.exp %283 : vector<8x64xf32>
    %cst_55 = arith.constant 1.000000e+00 : f32
    %285 = vector.broadcast %cst_55 : f32 to vector<8x64xf32>
    %286 = arith.addf %285, %284 : vector<8x64xf32>
    %287 = arith.divf %285, %286 : vector<8x64xf32>
    %288 = arith.mulf %279, %239 : vector<8x64xf32>
    %289 = arith.mulf %278, %281 : vector<8x64xf32>
    %290 = arith.addf %288, %289 : vector<8x64xf32>
    %291 = math.tanh %290 : vector<8x64xf32>
    %292 = arith.mulf %287, %291 : vector<8x64xf32>
    %cst_56 = arith.constant dense<0.000000e+00> : vector<8x384xf32>
    %293 = tpu.matmul %292, %7, %cst_56 {dimension_numbers = #tpu.dot_dimension_numbers<[1], [0], [0], [1], [0, 0, 1, 1], [], []>} : vector<8x64xf32>, vector<64x384xf32>, vector<8x384xf32> -> vector<8x384xf32>
    %cst_57 = arith.constant dense<0.000000e+00> : vector<8x128xf32>
    %294 = tpu.matmul %268, %8, %cst_57 {dimension_numbers = #tpu.dot_dimension_numbers<[1], [0], [0], [1], [0, 0, 1, 1], [], []>} : vector<8x32xf32>, vector<32x128xf32>, vector<8x128xf32> -> vector<8x128xf32>
    %295 = vector.broadcast %9 : vector<1x128xf32> to vector<8x128xf32>
    %296 = arith.addf %294, %295 : vector<8x128xf32>
    %297 = vector.extract_strided_slice %293 {offsets = [0, 256], sizes = [8, 128], strides = [1, 1]} : vector<8x384xf32> to vector<8x128xf32>
    %298 = arith.addf %296, %297 : vector<8x128xf32>
    %299 = vector.extract_strided_slice %298 {offsets = [0, 0], sizes = [8, 64], strides = [1, 1]} : vector<8x128xf32> to vector<8x64xf32>
    %300 = arith.negf %299 : vector<8x64xf32>
    %301 = math.exp %300 : vector<8x64xf32>
    %cst_58 = arith.constant 1.000000e+00 : f32
    %302 = vector.broadcast %cst_58 : f32 to vector<8x64xf32>
    %303 = arith.addf %302, %301 : vector<8x64xf32>
    %304 = arith.divf %302, %303 : vector<8x64xf32>
    %305 = vector.extract_strided_slice %304 {offsets = [0, 0], sizes = [8, 32], strides = [1, 1]} : vector<8x64xf32> to vector<8x32xf32>
    %306 = vector.extract_strided_slice %304 {offsets = [0, 32], sizes = [8, 32], strides = [1, 1]} : vector<8x64xf32> to vector<8x32xf32>
    %307 = vector.extract_strided_slice %298 {offsets = [0, 64], sizes = [8, 32], strides = [1, 1]} : vector<8x128xf32> to vector<8x32xf32>
    %308 = math.tanh %307 : vector<8x32xf32>
    %309 = vector.extract_strided_slice %298 {offsets = [0, 96], sizes = [8, 32], strides = [1, 1]} : vector<8x128xf32> to vector<8x32xf32>
    %310 = arith.negf %309 : vector<8x32xf32>
    %311 = math.exp %310 : vector<8x32xf32>
    %cst_59 = arith.constant 1.000000e+00 : f32
    %312 = vector.broadcast %cst_59 : f32 to vector<8x32xf32>
    %313 = arith.addf %312, %311 : vector<8x32xf32>
    %314 = arith.divf %312, %313 : vector<8x32xf32>
    %315 = arith.mulf %306, %266 : vector<8x32xf32>
    %316 = arith.mulf %305, %308 : vector<8x32xf32>
    %317 = arith.addf %315, %316 : vector<8x32xf32>
    %318 = math.tanh %317 : vector<8x32xf32>
    %319 = arith.mulf %314, %318 : vector<8x32xf32>
    %c48 = arith.constant 48 : index
    %c0_60 = arith.constant 0 : index
    %320 = vector.load %arg11[%c48, %c0_60] : memref<64x256xf32, #tpu.memory_space<vmem>>, vector<8x256xf32>
    %321 = vector.extract_strided_slice %293 {offsets = [0, 0], sizes = [8, 256], strides = [1, 1]} : vector<8x384xf32> to vector<8x256xf32>
    %322 = arith.addf %320, %321 : vector<8x256xf32>
    %323 = vector.extract_strided_slice %322 {offsets = [0, 0], sizes = [8, 128], strides = [1, 1]} : vector<8x256xf32> to vector<8x128xf32>
    %324 = arith.negf %323 : vector<8x128xf32>
    %325 = math.exp %324 : vector<8x128xf32>
    %cst_61 = arith.constant 1.000000e+00 : f32
    %326 = vector.broadcast %cst_61 : f32 to vector<8x128xf32>
    %327 = arith.addf %326, %325 : vector<8x128xf32>
    %328 = arith.divf %326, %327 : vector<8x128xf32>
    %329 = vector.extract_strided_slice %328 {offsets = [0, 0], sizes = [8, 64], strides = [1, 1]} : vector<8x128xf32> to vector<8x64xf32>
    %330 = vector.extract_strided_slice %328 {offsets = [0, 64], sizes = [8, 64], strides = [1, 1]} : vector<8x128xf32> to vector<8x64xf32>
    %331 = vector.extract_strided_slice %322 {offsets = [0, 128], sizes = [8, 64], strides = [1, 1]} : vector<8x256xf32> to vector<8x64xf32>
    %332 = math.tanh %331 : vector<8x64xf32>
    %333 = vector.extract_strided_slice %322 {offsets = [0, 192], sizes = [8, 64], strides = [1, 1]} : vector<8x256xf32> to vector<8x64xf32>
    %334 = arith.negf %333 : vector<8x64xf32>
    %335 = math.exp %334 : vector<8x64xf32>
    %cst_62 = arith.constant 1.000000e+00 : f32
    %336 = vector.broadcast %cst_62 : f32 to vector<8x64xf32>
    %337 = arith.addf %336, %335 : vector<8x64xf32>
    %338 = arith.divf %336, %337 : vector<8x64xf32>
    %339 = arith.mulf %330, %290 : vector<8x64xf32>
    %340 = arith.mulf %329, %332 : vector<8x64xf32>
    %341 = arith.addf %339, %340 : vector<8x64xf32>
    %342 = math.tanh %341 : vector<8x64xf32>
    %343 = arith.mulf %338, %342 : vector<8x64xf32>
    %cst_63 = arith.constant dense<0.000000e+00> : vector<8x384xf32>
    %344 = tpu.matmul %343, %7, %cst_63 {dimension_numbers = #tpu.dot_dimension_numbers<[1], [0], [0], [1], [0, 0, 1, 1], [], []>} : vector<8x64xf32>, vector<64x384xf32>, vector<8x384xf32> -> vector<8x384xf32>
    %cst_64 = arith.constant dense<0.000000e+00> : vector<8x128xf32>
    %345 = tpu.matmul %319, %8, %cst_64 {dimension_numbers = #tpu.dot_dimension_numbers<[1], [0], [0], [1], [0, 0, 1, 1], [], []>} : vector<8x32xf32>, vector<32x128xf32>, vector<8x128xf32> -> vector<8x128xf32>
    %346 = vector.broadcast %9 : vector<1x128xf32> to vector<8x128xf32>
    %347 = arith.addf %345, %346 : vector<8x128xf32>
    %348 = vector.extract_strided_slice %344 {offsets = [0, 256], sizes = [8, 128], strides = [1, 1]} : vector<8x384xf32> to vector<8x128xf32>
    %349 = arith.addf %347, %348 : vector<8x128xf32>
    %350 = vector.extract_strided_slice %349 {offsets = [0, 0], sizes = [8, 64], strides = [1, 1]} : vector<8x128xf32> to vector<8x64xf32>
    %351 = arith.negf %350 : vector<8x64xf32>
    %352 = math.exp %351 : vector<8x64xf32>
    %cst_65 = arith.constant 1.000000e+00 : f32
    %353 = vector.broadcast %cst_65 : f32 to vector<8x64xf32>
    %354 = arith.addf %353, %352 : vector<8x64xf32>
    %355 = arith.divf %353, %354 : vector<8x64xf32>
    %356 = vector.extract_strided_slice %355 {offsets = [0, 0], sizes = [8, 32], strides = [1, 1]} : vector<8x64xf32> to vector<8x32xf32>
    %357 = vector.extract_strided_slice %355 {offsets = [0, 32], sizes = [8, 32], strides = [1, 1]} : vector<8x64xf32> to vector<8x32xf32>
    %358 = vector.extract_strided_slice %349 {offsets = [0, 64], sizes = [8, 32], strides = [1, 1]} : vector<8x128xf32> to vector<8x32xf32>
    %359 = math.tanh %358 : vector<8x32xf32>
    %360 = vector.extract_strided_slice %349 {offsets = [0, 96], sizes = [8, 32], strides = [1, 1]} : vector<8x128xf32> to vector<8x32xf32>
    %361 = arith.negf %360 : vector<8x32xf32>
    %362 = math.exp %361 : vector<8x32xf32>
    %cst_66 = arith.constant 1.000000e+00 : f32
    %363 = vector.broadcast %cst_66 : f32 to vector<8x32xf32>
    %364 = arith.addf %363, %362 : vector<8x32xf32>
    %365 = arith.divf %363, %364 : vector<8x32xf32>
    %366 = arith.mulf %357, %317 : vector<8x32xf32>
    %367 = arith.mulf %356, %359 : vector<8x32xf32>
    %368 = arith.addf %366, %367 : vector<8x32xf32>
    %369 = math.tanh %368 : vector<8x32xf32>
    %370 = arith.mulf %365, %369 : vector<8x32xf32>
    %c56 = arith.constant 56 : index
    %c0_67 = arith.constant 0 : index
    %371 = vector.load %arg11[%c56, %c0_67] : memref<64x256xf32, #tpu.memory_space<vmem>>, vector<8x256xf32>
    %372 = vector.extract_strided_slice %344 {offsets = [0, 0], sizes = [8, 256], strides = [1, 1]} : vector<8x384xf32> to vector<8x256xf32>
    %373 = arith.addf %371, %372 : vector<8x256xf32>
    %374 = vector.extract_strided_slice %373 {offsets = [0, 0], sizes = [8, 128], strides = [1, 1]} : vector<8x256xf32> to vector<8x128xf32>
    %375 = arith.negf %374 : vector<8x128xf32>
    %376 = math.exp %375 : vector<8x128xf32>
    %cst_68 = arith.constant 1.000000e+00 : f32
    %377 = vector.broadcast %cst_68 : f32 to vector<8x128xf32>
    %378 = arith.addf %377, %376 : vector<8x128xf32>
    %379 = arith.divf %377, %378 : vector<8x128xf32>
    %380 = vector.extract_strided_slice %379 {offsets = [0, 0], sizes = [8, 64], strides = [1, 1]} : vector<8x128xf32> to vector<8x64xf32>
    %381 = vector.extract_strided_slice %379 {offsets = [0, 64], sizes = [8, 64], strides = [1, 1]} : vector<8x128xf32> to vector<8x64xf32>
    %382 = vector.extract_strided_slice %373 {offsets = [0, 128], sizes = [8, 64], strides = [1, 1]} : vector<8x256xf32> to vector<8x64xf32>
    %383 = math.tanh %382 : vector<8x64xf32>
    %384 = vector.extract_strided_slice %373 {offsets = [0, 192], sizes = [8, 64], strides = [1, 1]} : vector<8x256xf32> to vector<8x64xf32>
    %385 = arith.negf %384 : vector<8x64xf32>
    %386 = math.exp %385 : vector<8x64xf32>
    %cst_69 = arith.constant 1.000000e+00 : f32
    %387 = vector.broadcast %cst_69 : f32 to vector<8x64xf32>
    %388 = arith.addf %387, %386 : vector<8x64xf32>
    %389 = arith.divf %387, %388 : vector<8x64xf32>
    %390 = arith.mulf %381, %341 : vector<8x64xf32>
    %391 = arith.mulf %380, %383 : vector<8x64xf32>
    %392 = arith.addf %390, %391 : vector<8x64xf32>
    %393 = math.tanh %392 : vector<8x64xf32>
    %394 = arith.mulf %389, %393 : vector<8x64xf32>
    %cst_70 = arith.constant dense<0.000000e+00> : vector<8x384xf32>
    %395 = tpu.matmul %394, %7, %cst_70 {dimension_numbers = #tpu.dot_dimension_numbers<[1], [0], [0], [1], [0, 0, 1, 1], [], []>} : vector<8x64xf32>, vector<64x384xf32>, vector<8x384xf32> -> vector<8x384xf32>
    %cst_71 = arith.constant dense<0.000000e+00> : vector<8x128xf32>
    %396 = tpu.matmul %370, %8, %cst_71 {dimension_numbers = #tpu.dot_dimension_numbers<[1], [0], [0], [1], [0, 0, 1, 1], [], []>} : vector<8x32xf32>, vector<32x128xf32>, vector<8x128xf32> -> vector<8x128xf32>
    %397 = vector.broadcast %9 : vector<1x128xf32> to vector<8x128xf32>
    %398 = arith.addf %396, %397 : vector<8x128xf32>
    %399 = vector.extract_strided_slice %395 {offsets = [0, 256], sizes = [8, 128], strides = [1, 1]} : vector<8x384xf32> to vector<8x128xf32>
    %400 = arith.addf %398, %399 : vector<8x128xf32>
    %401 = vector.extract_strided_slice %400 {offsets = [0, 0], sizes = [8, 64], strides = [1, 1]} : vector<8x128xf32> to vector<8x64xf32>
    %402 = arith.negf %401 : vector<8x64xf32>
    %403 = math.exp %402 : vector<8x64xf32>
    %cst_72 = arith.constant 1.000000e+00 : f32
    %404 = vector.broadcast %cst_72 : f32 to vector<8x64xf32>
    %405 = arith.addf %404, %403 : vector<8x64xf32>
    %406 = arith.divf %404, %405 : vector<8x64xf32>
    %407 = vector.extract_strided_slice %406 {offsets = [0, 0], sizes = [8, 32], strides = [1, 1]} : vector<8x64xf32> to vector<8x32xf32>
    %408 = vector.extract_strided_slice %406 {offsets = [0, 32], sizes = [8, 32], strides = [1, 1]} : vector<8x64xf32> to vector<8x32xf32>
    %409 = vector.extract_strided_slice %400 {offsets = [0, 64], sizes = [8, 32], strides = [1, 1]} : vector<8x128xf32> to vector<8x32xf32>
    %410 = math.tanh %409 : vector<8x32xf32>
    %411 = vector.extract_strided_slice %400 {offsets = [0, 96], sizes = [8, 32], strides = [1, 1]} : vector<8x128xf32> to vector<8x32xf32>
    %412 = arith.negf %411 : vector<8x32xf32>
    %413 = math.exp %412 : vector<8x32xf32>
    %cst_73 = arith.constant 1.000000e+00 : f32
    %414 = vector.broadcast %cst_73 : f32 to vector<8x32xf32>
    %415 = arith.addf %414, %413 : vector<8x32xf32>
    %416 = arith.divf %414, %415 : vector<8x32xf32>
    %417 = arith.mulf %408, %368 : vector<8x32xf32>
    %418 = arith.mulf %407, %410 : vector<8x32xf32>
    %419 = arith.addf %417, %418 : vector<8x32xf32>
    %420 = math.tanh %419 : vector<8x32xf32>
    %421 = arith.mulf %416, %420 : vector<8x32xf32>
    %422 = tpu.concatenate %64, %115, %166, %217, %268, %319, %370, %421 in 0 : vector<8x32xf32>, vector<8x32xf32>, vector<8x32xf32>, vector<8x32xf32>, vector<8x32xf32>, vector<8x32xf32>, vector<8x32xf32>, vector<8x32xf32> -> vector<64x32xf32>
    %c0_74 = arith.constant 0 : index
    %c0_75 = arith.constant 0 : index
    %423 = vector.load %arg6[%c0_74, %c0_75] : memref<32x16xf32, #tpu.memory_space<vmem>>, vector<32x16xf32>
    %cst_76 = arith.constant dense<0.000000e+00> : vector<64x16xf32>
    %424 = tpu.matmul %422, %423, %cst_76 {dimension_numbers = #tpu.dot_dimension_numbers<[1], [0], [0], [1], [0, 0, 1, 1], [], []>} : vector<64x32xf32>, vector<32x16xf32>, vector<64x16xf32> -> vector<64x16xf32>
    %c0_77 = arith.constant 0 : index
    %c0_78 = arith.constant 0 : index
    %425 = vector.load %arg7[%c0_77, %c0_78] : memref<1x16xf32, #tpu.memory_space<vmem>>, vector<1x16xf32>
    %426 = vector.broadcast %425 : vector<1x16xf32> to vector<64x16xf32>
    %427 = arith.addf %424, %426 : vector<64x16xf32>
    %cst_79 = arith.constant 0.000000e+00 : f32
    %428 = vector.broadcast %cst_79 : f32 to vector<64x16xf32>
    %429 = arith.maximumf %427, %428 : vector<64x16xf32>
    %c0_80 = arith.constant 0 : index
    %c0_81 = arith.constant 0 : index
    %430 = vector.load %arg8[%c0_80, %c0_81] : memref<16x128xf32, #tpu.memory_space<vmem>>, vector<16x128xf32>
    %cst_82 = arith.constant dense<0.000000e+00> : vector<64x128xf32>
    %431 = tpu.matmul %429, %430, %cst_82 {dimension_numbers = #tpu.dot_dimension_numbers<[1], [0], [0], [1], [0, 0, 1, 1], [], []>} : vector<64x16xf32>, vector<16x128xf32>, vector<64x128xf32> -> vector<64x128xf32>
    %c0_83 = arith.constant 0 : index
    %c0_84 = arith.constant 0 : index
    %432 = vector.load %arg9[%c0_83, %c0_84] : memref<1x128xf32, #tpu.memory_space<vmem>>, vector<1x128xf32>
    %433 = vector.broadcast %432 : vector<1x128xf32> to vector<64x128xf32>
    %434 = arith.addf %431, %433 : vector<64x128xf32>
    %c0_85 = arith.constant 0 : index
    %c0_86 = arith.constant 0 : index
    %435 = vector.load %arg10[%c0_85, %c0_86] : memref<64x128xf32, #tpu.memory_space<vmem>>, vector<64x128xf32>
    tpu.vector_store %arg10[%c0_85, %c0_86], %434 {strides = array<i32>} : memref<64x128xf32, #tpu.memory_space<vmem>>, vector<64x128xf32>,
    return
  }
}

</mosaic_0001>

<bundles_post_ra>
// kernel: lstm_micro_expression_forward.1
= control target key start
LH: loop header
LB: loop body
LE: loop exit
PB: predicated region body
PF: predicated region fallthrough
CT: control target
= control target key end

     0   :  { %v3308_v3 = vmov 0.0   ;;  %vm59_vm0 = vcmask 130048   ;;  %v49_v6 = vlaneseq  ;;  %vm3310_vm1 = vmmov 0   ;;  %s3311_s12 = smov 32   ;;  %s4345_s1 = inlined_call_operand.vmem [shape: f32[16,256], index: 1, kind: input, shape index: {}]   ;;  %s4346_s0 = inlined_call_operand.vmem [shape: f32[64,16], index: 0, kind: input, shape index: {}]   ;;  %s4347_s2 = inlined_call_operand.vmem [shape: f32[1,256], index: 2, kind: input, shape index: {}]   ;;  %s4348_s4 = inlined_call_operand.vmem [shape: f32[32,128], index: 4, kind: input, shape index: {}]   ;;  %s4349_s3 = inlined_call_operand.vmem [shape: f32[64,384], index: 3, kind: input, shape index: {}]   ;;  %s4350_s5 = inlined_call_operand.vmem [shape: f32[1,128], index: 5, kind: input, shape index: {}]   ;;  %s4351_s6 = inlined_call_operand.vmem [shape: f32[32,16], index: 6, kind: input, shape index: {}]   ;;  %s4352_s8 = inlined_call_operand.vmem [shape: f32[16,128], index: 8, kind: input, shape index: {}]   ;;  %s4353_s7 = inlined_call_operand.vmem [shape: f32[1,16], index: 7, kind: input, shape index: {}]   ;;  %s4354_s9 = inlined_call_operand.vmem [shape: f32[1,128], index: 9, kind: input, shape index: {}]   ;;  %s4355_s10 = inlined_call_operand.vmem [shape: f32[64,128], index: 10, kind: output, shape index: {}]  }
   0x1   :  { %v46_v0 = vld [vmem:[%s4345_s1 + $0x18] sm:$0xff]  ;;  %v45_v1 = vld [vmem:[%s4345_s1 + $0x10] sm:$0xff]  ;;  %v44_v2 = vld [vmem:[%s4345_s1 + $0x8] sm:$0xff]  ;;  %148 = vmatprep.mubr.f32.mxu0 %v3308_v3  ;;  %338 = vmatprep.mubr.f32.mxu1 %v3308_v3  ;;  %vm271_vm2 = vcmask 523264   ;;  %vm421_vm3 = vcmask 261120  }
   0x2   :  { %112 = vmatprep.subr.mxu0 %v46_v0  ;;  %v43_v4 = vld [vmem:[%s4345_s1] sm:$0xff]  ;;  %v50_v7 = vshrl.u32 %v49_v6, 7  ;;  %s3309_s1 = smov 64   ;;  %v36_v23 = vld [vmem:[%s4346_s0 + $0x8] sm:$0xff]  ;;  %v3409_v24 = vld [vmem:[%s4348_s4 + $0x18] sm:$0xff] }
   0x3   :  { %113 = vmatpush1.msra.mxu0 %v45_v1  ;;  %v35_v5 = vld [vmem:[%s4346_s0] sm:$0xff]  ;;  %v3415_v25 = vld [vmem:[%s4349_s3 + $0xb0] sm:$0xff]  ;;  %v3420_v26 = vld [vmem:[%s4349_s3 + $0xa8] sm:$0xff] }
   0x4   :  { %114 = vmatprep.subr.mxu0 %v44_v2  ;;  %v51_v8 = vsub.s32 0, %v50_v7  ;;  %v47_v9 = vld [vmem:[%s4347_s2] sm:$0x3]  ;;  %v55_v14 = vsub.s32 1, %v50_v7  ;;  %290 = vmatprep.subr.mxu1 %v3415_v25  ;;  %v3427_v27 = vld [vmem:[%s4349_s3 + $0x98] sm:$0xff]  ;;  %v3432_v28 = vld [vmem:[%s4349_s3 + $0x90] sm:$0xff] }
   0x5   :  { %115 = vmatpush1.msra.mxu0 %v43_v4  ;;  %v37_v29 = vld [vmem:[%s4346_s0 + $0x10] sm:$0xff]  ;;  %291 = vmatpush1.msra.mxu1 %v3420_v26  ;;  %v3442_v30 = vld [vmem:[%s4349_s3 + $0x80] sm:$0xff]  ;;  %v3453_v32 = vld [vmem:[%s4349_s3 + $0x78] sm:$0xff] }
   0x6   :  { %2632 = vmatmul.mubr.msk.f32.vlgmr.msra.gmra.mxu0 %vm59_vm0, %v35_v5  ;;  %2858 = vmatprep.subr.mxu0 %v3308_v3  ;;  %v3390_v10 = vrot.slane %v47_v9, %v51_v8  ;;  %v3393_v15 = vrot.slane %v47_v9, %v55_v14  ;;  %v3447_v31 = vld [vmem:[%s4348_s4 + $0x10] sm:$0xff]  ;;  %v3461_v33 = vld [vmem:[%s4349_s3 + $0x68] sm:$0xff]  ;;  %v3468_v34 = vld [vmem:[%s4349_s3 + $0x60] sm:$0xff] }
   0x7   :  { %154 = vmatprep.mubr.f32.mxu0 %v3308_v3  ;;  %2859 = vmatpush3.msra.mxu0 %v3409_v24  ;;  %v38_v35 = vld [vmem:[%s4346_s0 + $0x18] sm:$0xff]  ;;  %v3478_v36 = vld [vmem:[%s4349_s3 + $0x50] sm:$0xff]  ;;  %v3484_v37 = vld [vmem:[%s4349_s3 + $0x48] sm:$0xff] }
   0x8   :  { %292 = vmatprep.subr.mxu1 %v3427_v27  ;;  %2860 = vmatprep.subr.mxu0 %v3308_v3  ;;  %v3490_v38 = vld [vmem:[%s4348_s4 + $0x8] sm:$0xff]  ;;  %v3497_v39 = vld [vmem:[%s4349_s3 + $0x38] sm:$0xff]  ;;  %v3504_v40 = vld [vmem:[%s4349_s3 + $0x30] sm:$0xff] }
   0x9   :  { %293 = vmatpush1.msra.mxu1 %v3432_v28  ;;  %2861 = vmatpush3.msra.mxu0 %v3447_v31  ;;  %v39_v41 = vld [vmem:[%s4346_s0 + $0x20] sm:$0xff]  ;;  %v3520_v43 = vld [vmem:[%s4349_s3 + $0x18] sm:$0xff]  ;;  %v3528_v44 = vld [vmem:[%s4349_s3 + $0x8] sm:$0xff] }
   0xa   :  { %2633 = vmatmul.mubr.msk.f32.gmra.mxu0 %vm59_vm0, %v36_v23  ;;  %294 = vmatprep.subr.mxu1 %v3442_v30  ;;  %v3513_v42 = vld [vmem:[%s4349_s3 + $0x20] sm:$0xff]  ;;  %v40_v46 = vld [vmem:[%s4346_s0 + $0x28] sm:$0xff]  ;;  %v41_v53 = vld [vmem:[%s4346_s0 + $0x30] sm:$0xff] }
   0xb   :  { %160 = vmatprep.mubr.f32.mxu0 %v3308_v3  ;;  %295 = vmatpush1.msra.mxu1 %v3453_v32  ;;  %v3535_v45 = vld [vmem:[%s4349_s3] sm:$0xff]  ;;  %v42_v55 = vld [vmem:[%s4346_s0 + $0x38] sm:$0xff]  ;;  %v3589_v61 = vld [vmem:[%s4349_s3 + $0x88] sm:$0xff] }
   0xc   :  { %296 = vmatprep.subr.mxu1 %v3461_v33  ;;  %2862 = vmatprep.subr.mxu0 %v3308_v3  ;;  %v3559_v54 = vld [vmem:[%s4348_s4] sm:$0xff]  ;;  %v3572_v59 = vld [vmem:[%s4349_s3 + $0xb8] sm:$0xff]  ;;  %v3596_v62 = vld [vmem:[%s4349_s3 + $0x70] sm:$0xff] }
   0xd   :  { %297 = vmatpush1.msra.mxu1 %v3468_v34  ;;  %2863 = vmatpush3.msra.mxu0 %v3490_v38  ;;  %v3580_v60 = vld [vmem:[%s4349_s3 + $0xa0] sm:$0xff]  ;;  %v3603_v63 = vld [vmem:[%s4349_s3 + $0x58] sm:$0xff]  ;;  %v3617_v1 = vld [vmem:[%s4349_s3 + $0x28] sm:$0xff] }
   0xe   :  { %2634 = vmatmul.mubr.msk.f32.gmra.mxu0 %vm59_vm0, %v37_v29  ;;  %298 = vmatprep.subr.mxu1 %v3478_v36  ;;  %v3610_v0 = vld [vmem:[%s4349_s3 + $0x40] sm:$0xff]  ;;  %v3624_v2 = vld [vmem:[%s4349_s3 + $0x10] sm:$0xff] }
   0xf   :  { %166 = vmatprep.mubr.f32.mxu0 %v3308_v3  ;;  %299 = vmatpush1.msra.mxu1 %v3484_v37 }
  0x10   :  { %300 = vmatprep.subr.mxu1 %v3497_v39  ;;  %2864 = vmatprep.subr.mxu0 %v3308_v3 }
  0x11   :  { %301 = vmatpush1.msra.mxu1 %v3504_v40  ;;  %2865 = vmatpush3.msra.mxu0 %v3559_v54 }
  0x12   :  { %2635 = vmatmul.mubr.msk.f32.gmra.mxu0 %vm59_vm0, %v38_v35  ;;  %302 = vmatprep.subr.mxu1 %v3513_v42 }
  0x13   :  { %172 = vmatprep.mubr.f32.mxu0 %v3308_v3  ;;  %303 = vmatpush1.msra.mxu1 %v3520_v43 }
  0x14   :  { %304 = vmatprep.subr.mxu1 %v3528_v44  ;;  %2869 = vmatprep.subr.mxu0 %v3308_v3 }
  0x15   :  { %305 = vmatpush1.msra.mxu1 %v3535_v45 }
  0x16   :  { %2636 = vmatmul.mubr.msk.f32.gmra.mxu0 %vm59_vm0, %v39_v41  ;;  %2839 = vmatprep.subr.mxu1 %v3308_v3 }
  0x17   :  { %178 = vmatprep.mubr.f32.mxu0 %v3308_v3 }
  0x1a   :  { %2637 = vmatmul.mubr.msk.f32.gmra.mxu0 %vm59_vm0, %v40_v46  ;;  %v3694_v46 = vld [vmem:[%s4350_s5] ss:$0 sm:$0xff] }
  0x1b   :  { %184 = vmatprep.mubr.f32.mxu0 %v3308_v3 }
  0x1e   :  { %2638 = vmatmul.mubr.msk.f32.gmra.mxu0 %vm59_vm0, %v41_v53 }
  0x1f   :  { %190 = vmatprep.mubr.f32.mxu0 %v3308_v3 }
  0x22   :  { %2639 = vmatmul.mubr.msk.f32.gmra.mxu0 %vm59_vm0, %v42_v55 }
  0x23   :  { %2866 = vmatprep.mubr.msk.f32.mxu0 %vm3310_vm1, %v3308_v3 }
  0x26   :  { %2867 = vmatmul.mubr.f32.vlgmr.msra.gmra.mxu0 %v3308_v3 }
  0x27   :  { %2870 = vmatpush3.msra.mxu0 %v3572_v59  ;;  %2885 = vmatprep.mubr.msk.f32.mxu0 %vm3310_vm1, %v3308_v3 }
  0x28   :  { %2871 = vmatprep.subr.mxu0 %v3308_v3 }
  0x29   :  { %2872 = vmatpush3.msra.mxu0 %v3580_v60 }
  0x2a   :  { %2873 = vmatprep.subr.mxu0 %v3308_v3 }
  0x2b   :  { %2874 = vmatpush3.msra.mxu0 %v3589_v61 }
  0x2c   :  { %2875 = vmatprep.subr.mxu0 %v3308_v3 }
  0x2d   :  { %2876 = vmatpush3.msra.mxu0 %v3596_v62 }
  0x2e   :  { %2877 = vmatprep.subr.mxu0 %v3308_v3 }
  0x2f   :  { %2878 = vmatpush3.msra.mxu0 %v3603_v63 }
  0x30   :  { %2879 = vmatprep.subr.mxu0 %v3308_v3 }
  0x31   :  { %2880 = vmatpush3.msra.mxu0 %v3610_v0 }
  0x32   :  { %2881 = vmatprep.subr.mxu0 %v3308_v3 }
  0x33   :  { %2882 = vmatpush3.msra.mxu0 %v3617_v1 }
  0x34   :  { %2883 = vmatprep.subr.mxu0 %v3308_v3 }
  0x35   :  { %2884 = vmatpush3.msra.mxu0 %v3624_v2 }
  0x36   :  { %839 = vmatprep.subr.mxu0 %v3415_v25 }
  0xc6   :  { %v150_v11 = vpop.f32.mrf.mxu0 }
  0xc7   :  { %v151_v12 = vadd.f32 %v150_v11, %v3390_v10 }
  0xc8   :  { %v152_v16 = vpop.f32.mrf.mxu0 }
  0xc9   :  { %v2640_v13 = vmul.f32 -1.442695, %v151_v12  ;;  %v3396_v17 = vadd.f32 %v152_v16, %v3393_v15 }
  0xca   :  { %v156_v5 = vpop.f32.mrf.mxu0 }
  0xcb   :  { %3119 = vpow2.f32 %v2640_v13  ;;  %v2641_v47 = vmul.f32 -1.442695, %v3396_v17  ;;  %v157_v23 = vadd.f32 %v156_v5, %v3390_v10 }
  0xcc   :  { %3121 = vtanh.f32 %v3396_v17  ;;  %v158_v6 = vpop.f32.mrf.mxu0 }
  0xce   :  { %v3666_v7 = vpop.f32.mrf.mxu0 }
  0xd0   :  { %v3668_v8 = vpop.f32.mrf.mxu0 }
  0xd2   :  { %v3670_v9 = vpop.f32.mrf.mxu0 }
  0xd4   :  { %v3672_v11 = vpop.f32.mrf.mxu0 }
  0xd6   :  { %v3674_v12 = vpop.f32.mrf.mxu0 }
  0xd8   :  { %v3120_v18 = vpop.eup %3119  ;;  %v3676_v13 = vpop.f32.mrf.mxu0 }
  0xd9   :  { %v249_v19 = vadd.f32 1.0, %v3120_v18  ;;  %v3122_v20 = vpop.eup %3121 }
  0xda   :  { %v3678_v14 = vpop.f32.mrf.mxu0 }
  0xdb   :  { %3123 = vrcp.f32 %v249_v19 }
  0xdc   :  { %3125 = vpow2.f32 %v2641_v47  ;;  %v3680_v16 = vpop.f32.mrf.mxu0 }
  0xde   :  { %v3682_v17 = vpop.f32.mrf.mxu0 }
  0xe0   :  { %v3684_v18 = vpop.f32.mrf.mxu0 }
  0xe2   :  { %v3686_v19 = vpop.f32.mrf.mxu0 }
  0xe8   :  { %v3399_v21 = vpop.eup %3123 }
  0xe9   :  { %v260_v22 = vmul.f32 %v3399_v21, %v3122_v20  ;;  %v3126_v48 = vpop.eup %3125  ;;  %v259_v50 = vmul.f32 0.0, %v3399_v21  ;;  %v3688_v20 = vpop.f32.mrf.mxu0 }
  0xea   :  { %v256_v49 = vadd.f32 1.0, %v3126_v48 }
  0xeb   :  { %262 = vrot.lane.b32.xlu0 %v260_v22, %s3309_s1  ;;  %v491_v21 = vpop.f32.mrf.mxu0 }
  0xec   :  { %3127 = vrcp.f32 %v256_v49  ;;  %v492_v48 = vadd.f32 %v3694_v46, %v491_v21  ;;  %v159_v49 = vadd.f32 %v158_v6, %v3393_v15 }
  0xed   :  { %v2868_v22 = vpop.f32.mrf.mxu0 }
  0xf9   :  { %v3128_v56 = vpop.eup %3127 }
 0x15d   :  { %v263_v51 = vpop.permute.xlu0 %262 }
 0x15e   :  { %v3548_v52 = vadd.f32 %v263_v51, %v259_v50 }
 0x160   :  { %3129 = vtanh.f32 %v3548_v52 }
 0x16d   :  { %v3130_v57 = vpop.eup %3129 }
 0x16e   :  { %v267_v58 = vmul.f32 %v3130_v57, %v3128_v56 }
 0x170   :  { %269 = vrot.lane.b32.xlu0 %v267_v58, %s3309_s1 }
 0x1e2   :  { %v270_v4 = vpop.permute.xlu0 %269 }
 0x1e3   :  { %2642 = vmatmul.mubr.msk.f32.vlgmr.msra.gmra.mxu1 %vm271_vm2, %v270_v4 }
 0x1e4   :  { %2840 = vmatpush3.msra.mxu1 %v3572_v59  ;;  %2855 = vmatprep.mubr.msk.f32.mxu1 %vm3310_vm1, %v3308_v3 }
 0x1e5   :  { %2841 = vmatprep.subr.mxu1 %v3308_v3 }
 0x1e6   :  { %2842 = vmatpush3.msra.mxu1 %v3580_v60 }
 0x1e7   :  { %2843 = vmatprep.subr.mxu1 %v3308_v3 }
 0x1e8   :  { %2844 = vmatpush3.msra.mxu1 %v3589_v61 }
 0x1e9   :  { %2845 = vmatprep.subr.mxu1 %v3308_v3 }
 0x1ea   :  { %2846 = vmatpush3.msra.mxu1 %v3596_v62 }
 0x1eb   :  { %2847 = vmatprep.subr.mxu1 %v3308_v3 }
 0x1ec   :  { %2848 = vmatpush3.msra.mxu1 %v3603_v63 }
 0x1ed   :  { %2849 = vmatprep.subr.mxu1 %v3308_v3 }
 0x1ee   :  { %2850 = vmatpush3.msra.mxu1 %v3610_v0 }
 0x1ef   :  { %2851 = vmatprep.subr.mxu1 %v3308_v3 }
 0x1f0   :  { %2852 = vmatpush3.msra.mxu1 %v3617_v1 }
 0x1f1   :  { %2853 = vmatprep.subr.mxu1 %v3308_v3 }
 0x1f2   :  { %2854 = vmatpush3.msra.mxu1 %v3624_v2 }
 0x1f3   :  { %2856 = vmatmul.mubr.msk.f32.vlgmr.msra.gmra.mxu1 %vm271_vm2, %v270_v4  ;;  %567 = vmatprep.subr.mxu1 %v3415_v25 }
 0x1f4   :  { %568 = vmatpush1.msra.mxu1 %v3420_v26  ;;  %615 = vmatprep.mubr.f32.mxu1 %v3308_v3 }
 0x1f5   :  { %569 = vmatprep.subr.mxu1 %v3427_v27 }
 0x1f6   :  { %570 = vmatpush1.msra.mxu1 %v3432_v28 }
 0x1f7   :  { %571 = vmatprep.subr.mxu1 %v3442_v30 }
 0x1f8   :  { %572 = vmatpush1.msra.mxu1 %v3453_v32 }
 0x1f9   :  { %573 = vmatprep.subr.mxu1 %v3461_v33 }
 0x1fa   :  { %574 = vmatpush1.msra.mxu1 %v3468_v34 }
 0x1fb   :  { %575 = vmatprep.subr.mxu1 %v3478_v36 }
 0x1fc   :  { %576 = vmatpush1.msra.mxu1 %v3484_v37 }
 0x1fd   :  { %577 = vmatprep.subr.mxu1 %v3497_v39 }
 0x1fe   :  { %578 = vmatpush1.msra.mxu1 %v3504_v40 }
 0x1ff   :  { %579 = vmatprep.subr.mxu1 %v3513_v42 }
 0x200   :  { %580 = vmatpush1.msra.mxu1 %v3520_v43 }
 0x201   :  { %581 = vmatprep.subr.mxu1 %v3528_v44 }
 0x202   :  { %582 = vmatpush1.msra.mxu1 %v3535_v45 }
 0x203   :  { %2888 = vmatprep.subr.mxu1 %v3308_v3 }
 0x2a3   :  { %v340_v29 = vpop.f32.mrf.mxu1 }
 0x2a4   :  { %v522_v35 = vadd.f32 %v340_v29, %v157_v23 }
 0x2a5   :  { %v342_v47 = vpop.f32.mrf.mxu1 }
 0x2a6   :  { %v2646_v41 = vmul.f32 -1.442695, %v522_v35  ;;  %v523_v50 = vadd.f32 %v342_v47, %v159_v49 }
 0x2a8   :  { %3131 = vpow2.f32 %v2646_v41  ;;  %v2647_v23 = vmul.f32 -1.442695, %v523_v50 }
 0x2b3   :  { %v411_v51 = vpop.f32.mrf.mxu1 }
 0x2b4   :  { %v495_v53 = vadd.f32 %v492_v48, %v411_v51 }
 0x2b5   :  { %v3132_v55 = vpop.eup %3131  ;;  %v2857_v56 = vpop.f32.mrf.mxu1 }
 0x2b6   :  { %v527_v57 = vadd.f32 1.0, %v3132_v55  ;;  %3133 = vtanh.f32 %v495_v53  ;;  %v2645_v21 = vmul.f32 -1.442695, %v495_v53 }
 0x2b7   :  { %3135 = vtanh.f32 %v523_v50 }
 0x2b8   :  { %3137 = vrcp.f32 %v527_v57 }
 0x2b9   :  { %3139 = vpow2.f32 %v2645_v21 }
 0x2ba   :  { %3141 = vpow2.f32 %v2647_v23  ;;  %v163_v23 = vadd.f32 %v3666_v7, %v3390_v10 }
 0x2c3   :  { %v3134_v58 = vpop.eup %3133 }
 0x2c4   :  { %v3136_v4 = vpop.eup %3135  ;;  %505 = vrot.lane.b32.xlu1 %v3134_v58, %s3309_s1 }
 0x2c5   :  { %v3138_v5 = vpop.eup %3137 }
 0x2c6   :  { %v538_v22 = vmul.f32 %v3138_v5, %v3136_v4  ;;  %v3140_v6 = vpop.eup %3139  ;;  %v537_v51 = vmul.f32 %v3138_v5, %v3548_v52 }
 0x2c7   :  { %v499_v29 = vadd.f32 1.0, %v3140_v6  ;;  %v3142_v35 = vpop.eup %3141 }
 0x2c8   :  { %540 = vrot.lane.b32.xlu0 %v538_v22, %s3309_s1  ;;  %v534_v49 = vadd.f32 1.0, %v3142_v35 }
 0x2c9   :  { %3143 = vrcp.f32 %v499_v29 }
 0x2ca   :  { %3145 = vrcp.f32 %v534_v49 }
 0x2d6   :  { %v3144_v41 = vpop.eup %3143 }
 0x2d7   :  { %v3146_v50 = vpop.eup %3145  ;;  %v503_v58 = vmul.f32 0.0, %v3144_v41 }
 0x336   :  { %v506_v47 = vpop.permute.xlu1 %505 }
 0x337   :  { %v508_v48 = vmul.f32 %v3144_v41, %v506_v47 }
 0x339   :  { %510 = vrot.lane.b32.xlu1 %v508_v48, %s3311_s12 }
 0x33a   :  { %v541_v55 = vpop.permute.xlu0 %540 }
 0x33b   :  { %v3702_v56 = vadd.f32 %v541_v55, %v537_v51  ;;  %v165_v55 = vadd.f32 %v3668_v8, %v3393_v15 }
 0x33d   :  { %3147 = vtanh.f32 %v3702_v56 }
 0x34a   :  { %v3148_v53 = vpop.eup %3147 }
 0x34b   :  { %v545_v57 = vmul.f32 %v3148_v53, %v3146_v50 }
 0x34d   :  { %547 = vrot.lane.b32.xlu0 %v545_v57, %s3309_s1 }
 0x3ab   :  { %v511_v4 = vpop.permute.xlu1 %510 }
 0x3ac   :  { %v3706_v22 = vadd.f32 %v511_v4, %v503_v58 }
 0x3ae   :  { %3149 = vtanh.f32 %v3706_v22 }
 0x3bb   :  { %v3150_v21 = vpop.eup %3149 }
 0x3bc   :  { %516 = vrot.lane.b32.xlu1 %v3150_v21, %s3309_s1 }
 0x3bf   :  { %v548_v52 = vpop.permute.xlu0 %547 }
 0x3c0   :  { %2648 = vmatmul.mubr.msk.f32.vlgmr.msra.gmra.mxu1 %vm271_vm2, %v548_v52  ;;  %2886 = vmatmul.mubr.msk.f32.vlgmr.msra.gmra.mxu0 %vm271_vm2, %v548_v52 }
 0x3c1   :  { %2889 = vmatpush3.msra.mxu1 %v3409_v24  ;;  %2896 = vmatprep.mubr.msk.f32.mxu1 %vm3310_vm1, %v3308_v3 }
 0x3c2   :  { %2890 = vmatprep.subr.mxu1 %v3308_v3  ;;  %840 = vmatpush1.msra.mxu0 %v3420_v26 }
 0x3c3   :  { %2891 = vmatpush3.msra.mxu1 %v3447_v31  ;;  %841 = vmatprep.subr.mxu0 %v3427_v27 }
 0x3c4   :  { %2892 = vmatprep.subr.mxu1 %v3308_v3  ;;  %842 = vmatpush1.msra.mxu0 %v3432_v28 }
 0x3c5   :  { %2893 = vmatpush3.msra.mxu1 %v3490_v38  ;;  %843 = vmatprep.subr.mxu0 %v3442_v30 }
 0x3c6   :  { %2894 = vmatprep.subr.mxu1 %v3308_v3  ;;  %844 = vmatpush1.msra.mxu0 %v3453_v32 }
 0x3c7   :  { %2895 = vmatpush3.msra.mxu1 %v3559_v54  ;;  %845 = vmatprep.subr.mxu0 %v3461_v33 }
 0x3c8   :  { %2899 = vmatprep.subr.mxu1 %v3308_v3  ;;  %846 = vmatpush1.msra.mxu0 %v3468_v34 }
 0x3c9   :  { %847 = vmatprep.subr.mxu0 %v3478_v36  ;;  %887 = vmatprep.mubr.f32.mxu0 %v3308_v3 }
 0x3ca   :  { %848 = vmatpush1.msra.mxu0 %v3484_v37 }
 0x3cb   :  { %849 = vmatprep.subr.mxu0 %v3497_v39 }
 0x3cc   :  { %850 = vmatpush1.msra.mxu0 %v3504_v40 }
 0x3cd   :  { %851 = vmatprep.subr.mxu0 %v3513_v42 }
 0x3ce   :  { %852 = vmatpush1.msra.mxu0 %v3520_v43 }
 0x3cf   :  { %853 = vmatprep.subr.mxu0 %v3528_v44 }
 0x3d0   :  { %854 = vmatpush1.msra.mxu0 %v3535_v45 }
 0x3d1   :  { %2918 = vmatprep.subr.mxu0 %v3308_v3 }
 0x42e   :  { %v517_v5 = vpop.permute.xlu1 %516 }
 0x42f   :  { %v519_v6 = vmul.f32 %v3144_v41, %v517_v5 }
 0x431   :  { %693 = vrot.lane.b32.xlu1 %v519_v6, %s3311_s12 }
 0x480   :  { %v617_v29 = vpop.f32.mrf.mxu1  ;;  %v688_v35 = vpop.f32.mrf.mxu0 }
 0x481   :  { %v794_v47 = vadd.f32 %v617_v29, %v163_v23 }
 0x482   :  { %v2887_v48 = vpop.f32.mrf.mxu0  ;;  %v619_v51 = vpop.f32.mrf.mxu1 }
 0x483   :  { %v2652_v49 = vmul.f32 -1.442695, %v794_v47  ;;  %v795_v50 = vadd.f32 %v619_v51, %v165_v55 }
 0x485   :  { %3151 = vpow2.f32 %v2652_v49  ;;  %v2653_v47 = vmul.f32 -1.442695, %v795_v50 }
 0x486   :  { %3153 = vtanh.f32 %v795_v50 }
 0x492   :  { %v3152_v53 = vpop.eup %3151 }
 0x493   :  { %v799_v57 = vadd.f32 1.0, %v3152_v53  ;;  %v3154_v41 = vpop.eup %3153 }
 0x495   :  { %3155 = vrcp.f32 %v799_v57 }
 0x4a2   :  { %v3156_v58 = vpop.eup %3155 }
 0x4a3   :  { %v3744_v4 = vpop.permute.xlu1 %693  ;;  %v810_v7 = vmul.f32 %v3156_v58, %v3154_v41 }
 0x4a4   :  { %2897 = vmatmul.mubr.msk.f32.vlgmr.msra.gmra.mxu1 %vm421_vm3, %v3744_v4 }
 0x4a5   :  { %2900 = vmatpush3.msra.mxu1 %v3572_v59  ;;  %2915 = vmatprep.mubr.msk.f32.mxu1 %vm3310_vm1, %v3308_v3 }
 0x4a6   :  { %2901 = vmatprep.subr.mxu1 %v3308_v3 }
 0x4a7   :  { %2902 = vmatpush3.msra.mxu1 %v3580_v60 }
 0x4a8   :  { %2903 = vmatprep.subr.mxu1 %v3308_v3 }
 0x4a9   :  { %2904 = vmatpush3.msra.mxu1 %v3589_v61 }
 0x4aa   :  { %2905 = vmatprep.subr.mxu1 %v3308_v3 }
 0x4ab   :  { %2906 = vmatpush3.msra.mxu1 %v3596_v62 }
 0x4ac   :  { %2907 = vmatprep.subr.mxu1 %v3308_v3 }
 0x4ad   :  { %2908 = vmatpush3.msra.mxu1 %v3603_v63 }
 0x4ae   :  { %2909 = vmatprep.subr.mxu1 %v3308_v3 }
 0x4af   :  { %2910 = vmatpush3.msra.mxu1 %v3610_v0 }
 0x4b0   :  { %2911 = vmatprep.subr.mxu1 %v3308_v3 }
 0x4b1   :  { %2912 = vmatpush3.msra.mxu1 %v3617_v1 }
 0x4b2   :  { %2913 = vmatprep.subr.mxu1 %v3308_v3 }
 0x4b3   :  { %2914 = vmatpush3.msra.mxu1 %v3624_v2 }
 0x4b4   :  { %1111 = vmatprep.subr.mxu1 %v3415_v25 }
 0x564   :  { %v763_v8 = vpop.f32.mrf.mxu1 }
 0x565   :  { %v764_v21 = vadd.f32 %v3694_v46, %v763_v8 }
 0x566   :  { %v2898_v52 = vpop.f32.mrf.mxu1 }
 0x567   :  { %v767_v5 = vadd.f32 %v764_v21, %v688_v35  ;;  %v809_v35 = vmul.f32 %v3156_v58, %v3702_v56 }
 0x569   :  { %3157 = vtanh.f32 %v767_v5  ;;  %v2651_v23 = vmul.f32 -1.442695, %v767_v5 }
 0x56b   :  { %3159 = vpow2.f32 %v2651_v23 }
 0x56c   :  { %3161 = vpow2.f32 %v2653_v47 }
 0x576   :  { %v3158_v6 = vpop.eup %3157 }
 0x577   :  { %777 = vrot.lane.b32.xlu0 %v3158_v6, %s3309_s1 }
 0x578   :  { %v3160_v29 = vpop.eup %3159 }
 0x579   :  { %v771_v48 = vadd.f32 1.0, %v3160_v29  ;;  %v3162_v49 = vpop.eup %3161  ;;  %v169_v29 = vadd.f32 %v3670_v9, %v3390_v10 }
 0x57a   :  { %v806_v57 = vadd.f32 1.0, %v3162_v49 }
 0x57b   :  { %812 = vrot.lane.b32.xlu0 %v810_v7, %s3309_s1  ;;  %3163 = vrcp.f32 %v771_v48 }
 0x57c   :  { %3165 = vrcp.f32 %v806_v57 }
 0x588   :  { %v3164_v51 = vpop.eup %3163 }
 0x589   :  { %v3166_v7 = vpop.eup %3165  ;;  %v775_v52 = vmul.f32 %v3164_v51, %v3706_v22 }
 0x5e9   :  { %v778_v55 = vpop.permute.xlu0 %777 }
 0x5ea   :  { %v780_v53 = vmul.f32 %v3164_v51, %v778_v55 }
 0x5ec   :  { %782 = vrot.lane.b32.xlu1 %v780_v53, %s3311_s12 }
 0x5ed   :  { %v813_v41 = vpop.permute.xlu0 %812 }
 0x5ee   :  { %v3771_v8 = vadd.f32 %v813_v41, %v809_v35  ;;  %v171_v35 = vadd.f32 %v3672_v11, %v3393_v15 }
 0x5f0   :  { %3167 = vtanh.f32 %v3771_v8 }
 0x5fd   :  { %v3168_v50 = vpop.eup %3167 }
 0x5fe   :  { %v817_v21 = vmul.f32 %v3168_v50, %v3166_v7 }
 0x600   :  { %819 = vrot.lane.b32.xlu0 %v817_v21, %s3309_s1 }
 0x65e   :  { %v783_v5 = vpop.permute.xlu1 %782 }
 0x65f   :  { %v3776_v6 = vadd.f32 %v783_v5, %v775_v52 }
 0x661   :  { %3169 = vtanh.f32 %v3776_v6 }
 0x66e   :  { %v3170_v23 = vpop.eup %3169 }
 0x66f   :  { %788 = vrot.lane.b32.xlu1 %v3170_v23, %s3309_s1 }
 0x672   :  { %v820_v56 = vpop.permute.xlu0 %819 }
 0x673   :  { %2654 = vmatmul.mubr.msk.f32.vlgmr.msra.gmra.mxu0 %vm271_vm2, %v820_v56  ;;  %2916 = vmatmul.mubr.msk.f32.vlgmr.msra.gmra.mxu1 %vm271_vm2, %v820_v56 }
 0x674   :  { %2919 = vmatpush3.msra.mxu0 %v3409_v24  ;;  %2926 = vmatprep.mubr.msk.f32.mxu0 %vm3310_vm1, %v3308_v3 }
 0x675   :  { %2920 = vmatprep.subr.mxu0 %v3308_v3  ;;  %1112 = vmatpush1.msra.mxu1 %v3420_v26 }
 0x676   :  { %2921 = vmatpush3.msra.mxu0 %v3447_v31  ;;  %1113 = vmatprep.subr.mxu1 %v3427_v27 }
 0x677   :  { %2922 = vmatprep.subr.mxu0 %v3308_v3  ;;  %1114 = vmatpush1.msra.mxu1 %v3432_v28 }
 0x678   :  { %2923 = vmatpush3.msra.mxu0 %v3490_v38  ;;  %1115 = vmatprep.subr.mxu1 %v3442_v30 }
 0x679   :  { %2924 = vmatprep.subr.mxu0 %v3308_v3  ;;  %1116 = vmatpush1.msra.mxu1 %v3453_v32 }
 0x67a   :  { %2925 = vmatpush3.msra.mxu0 %v3559_v54  ;;  %1117 = vmatprep.subr.mxu1 %v3461_v33 }
 0x67b   :  { %2929 = vmatprep.subr.mxu0 %v3308_v3  ;;  %1118 = vmatpush1.msra.mxu1 %v3468_v34 }
 0x67c   :  { %1119 = vmatprep.subr.mxu1 %v3478_v36  ;;  %1159 = vmatprep.mubr.f32.mxu1 %v3308_v3 }
 0x67d   :  { %1120 = vmatpush1.msra.mxu1 %v3484_v37 }
 0x67e   :  { %1121 = vmatprep.subr.mxu1 %v3497_v39 }
 0x67f   :  { %1122 = vmatpush1.msra.mxu1 %v3504_v40 }
 0x680   :  { %1123 = vmatprep.subr.mxu1 %v3513_v42 }
 0x681   :  { %1124 = vmatpush1.msra.mxu1 %v3520_v43 }
 0x682   :  { %1125 = vmatprep.subr.mxu1 %v3528_v44 }
 0x683   :  { %1126 = vmatpush1.msra.mxu1 %v3535_v45 }
 0x684   :  { %2948 = vmatprep.subr.mxu1 %v3308_v3 }
 0x6e1   :  { %v789_v22 = vpop.permute.xlu1 %788 }
 0x6e2   :  { %v791_v58 = vmul.f32 %v3164_v51, %v789_v22 }
 0x6e4   :  { %965 = vrot.lane.b32.xlu1 %v791_v58, %s3311_s12 }
 0x733   :  { %v889_v47 = vpop.f32.mrf.mxu0  ;;  %v960_v48 = vpop.f32.mrf.mxu1 }
 0x734   :  { %v1066_v49 = vadd.f32 %v889_v47, %v169_v29 }
 0x735   :  { %v2917_v55 = vpop.f32.mrf.mxu1  ;;  %v891_v57 = vpop.f32.mrf.mxu0 }
 0x736   :  { %v2658_v53 = vmul.f32 -1.442695, %v1066_v49  ;;  %v1067_v41 = vadd.f32 %v891_v57, %v171_v35 }
 0x738   :  { %3171 = vpow2.f32 %v2658_v53  ;;  %v2659_v47 = vmul.f32 -1.442695, %v1067_v41 }
 0x739   :  { %3173 = vtanh.f32 %v1067_v41 }
 0x745   :  { %v3172_v7 = vpop.eup %3171 }
 0x746   :  { %v1071_v50 = vadd.f32 1.0, %v3172_v7  ;;  %v3174_v51 = vpop.eup %3173 }
 0x748   :  { %3175 = vrcp.f32 %v1071_v50 }
 0x755   :  { %v3176_v21 = vpop.eup %3175 }
 0x756   :  { %v3814_v52 = vpop.permute.xlu1 %965  ;;  %v1082_v9 = vmul.f32 %v3176_v21, %v3174_v51 }
 0x757   :  { %2927 = vmatmul.mubr.msk.f32.vlgmr.msra.gmra.mxu0 %vm421_vm3, %v3814_v52 }
 0x758   :  { %2930 = vmatpush3.msra.mxu0 %v3572_v59  ;;  %2945 = vmatprep.mubr.msk.f32.mxu0 %vm3310_vm1, %v3308_v3 }
 0x759   :  { %2931 = vmatprep.subr.mxu0 %v3308_v3 }
 0x75a   :  { %2932 = vmatpush3.msra.mxu0 %v3580_v60 }
 0x75b   :  { %2933 = vmatprep.subr.mxu0 %v3308_v3 }
 0x75c   :  { %2934 = vmatpush3.msra.mxu0 %v3589_v61 }
 0x75d   :  { %2935 = vmatprep.subr.mxu0 %v3308_v3 }
 0x75e   :  { %2936 = vmatpush3.msra.mxu0 %v3596_v62 }
 0x75f   :  { %2937 = vmatprep.subr.mxu0 %v3308_v3 }
 0x760   :  { %2938 = vmatpush3.msra.mxu0 %v3603_v63 }
 0x761   :  { %2939 = vmatprep.subr.mxu0 %v3308_v3 }
 0x762   :  { %2940 = vmatpush3.msra.mxu0 %v3610_v0 }
 0x763   :  { %2941 = vmatprep.subr.mxu0 %v3308_v3 }
 0x764   :  { %2942 = vmatpush3.msra.mxu0 %v3617_v1 }
 0x765   :  { %2943 = vmatprep.subr.mxu0 %v3308_v3 }
 0x766   :  { %2944 = vmatpush3.msra.mxu0 %v3624_v2 }
 0x767   :  { %1383 = vmatprep.subr.mxu0 %v3415_v25 }
 0x817   :  { %v1035_v11 = vpop.f32.mrf.mxu0 }
 0x818   :  { %v1036_v5 = vadd.f32 %v3694_v46, %v1035_v11 }
 0x819   :  { %v2928_v23 = vpop.f32.mrf.mxu0 }
 0x81a   :  { %v1039_v56 = vadd.f32 %v1036_v5, %v960_v48  ;;  %v1081_v48 = vmul.f32 %v3176_v21, %v3771_v8 }
 0x81c   :  { %3177 = vtanh.f32 %v1039_v56  ;;  %v2657_v58 = vmul.f32 -1.442695, %v1039_v56 }
 0x81e   :  { %3179 = vpow2.f32 %v2657_v58 }
 0x81f   :  { %3181 = vpow2.f32 %v2659_v47 }
 0x829   :  { %v3178_v22 = vpop.eup %3177 }
 0x82a   :  { %1049 = vrot.lane.b32.xlu0 %v3178_v22, %s3309_s1 }
 0x82b   :  { %v3180_v29 = vpop.eup %3179 }
 0x82c   :  { %v1043_v49 = vadd.f32 1.0, %v3180_v29  ;;  %v3182_v55 = vpop.eup %3181 }
 0x82d   :  { %v1078_v7 = vadd.f32 1.0, %v3182_v55 }
 0x82e   :  { %1084 = vrot.lane.b32.xlu0 %v1082_v9, %s3309_s1  ;;  %3183 = vrcp.f32 %v1043_v49 }
 0x82f   :  { %3185 = vrcp.f32 %v1078_v7 }
 0x83b   :  { %v3184_v53 = vpop.eup %3183 }
 0x83c   :  { %v3186_v9 = vpop.eup %3185  ;;  %v1047_v5 = vmul.f32 %v3184_v53, %v3776_v6 }
 0x89c   :  { %v1050_v57 = vpop.permute.xlu0 %1049 }
 0x89d   :  { %v1052_v35 = vmul.f32 %v3184_v53, %v1050_v57 }
 0x89f   :  { %1054 = vrot.lane.b32.xlu1 %v1052_v35, %s3311_s12 }
 0x8a0   :  { %v1085_v50 = vpop.permute.xlu0 %1084 }
 0x8a1   :  { %v3841_v51 = vadd.f32 %v1085_v50, %v1081_v48 }
 0x8a3   :  { %3187 = vtanh.f32 %v3841_v51 }
 0x8b0   :  { %v3188_v41 = vpop.eup %3187 }
 0x8b1   :  { %v1089_v11 = vmul.f32 %v3188_v41, %v3186_v9 }
 0x8b3   :  { %1091 = vrot.lane.b32.xlu0 %v1089_v11, %s3309_s1 }
 0x911   :  { %v1055_v23 = vpop.permute.xlu1 %1054 }
 0x912   :  { %v3846_v56 = vadd.f32 %v1055_v23, %v1047_v5 }
 0x914   :  { %3189 = vtanh.f32 %v3846_v56 }
 0x921   :  { %v3190_v22 = vpop.eup %3189 }
 0x922   :  { %1060 = vrot.lane.b32.xlu1 %v3190_v22, %s3309_s1 }
 0x925   :  { %v1092_v8 = vpop.permute.xlu0 %1091 }
 0x926   :  { %2660 = vmatmul.mubr.msk.f32.vlgmr.msra.gmra.mxu1 %vm271_vm2, %v1092_v8  ;;  %2946 = vmatmul.mubr.msk.f32.vlgmr.msra.gmra.mxu0 %vm271_vm2, %v1092_v8 }
 0x927   :  { %2949 = vmatpush3.msra.mxu1 %v3409_v24  ;;  %2956 = vmatprep.mubr.msk.f32.mxu1 %vm3310_vm1, %v3308_v3 }
 0x928   :  { %2950 = vmatprep.subr.mxu1 %v3308_v3  ;;  %1384 = vmatpush1.msra.mxu0 %v3420_v26 }
 0x929   :  { %2951 = vmatpush3.msra.mxu1 %v3447_v31  ;;  %1385 = vmatprep.subr.mxu0 %v3427_v27  ;;  %v175_v27 = vadd.f32 %v3674_v12, %v3390_v10 }
 0x92a   :  { %2952 = vmatprep.subr.mxu1 %v3308_v3  ;;  %1386 = vmatpush1.msra.mxu0 %v3432_v28 }
 0x92b   :  { %2953 = vmatpush3.msra.mxu1 %v3490_v38  ;;  %1387 = vmatprep.subr.mxu0 %v3442_v30 }
 0x92c   :  { %2954 = vmatprep.subr.mxu1 %v3308_v3  ;;  %1388 = vmatpush1.msra.mxu0 %v3453_v32 }
 0x92d   :  { %2955 = vmatpush3.msra.mxu1 %v3559_v54  ;;  %1389 = vmatprep.subr.mxu0 %v3461_v33 }
 0x92e   :  { %2959 = vmatprep.subr.mxu1 %v3308_v3  ;;  %1390 = vmatpush1.msra.mxu0 %v3468_v34 }
 0x92f   :  { %1391 = vmatprep.subr.mxu0 %v3478_v36  ;;  %1431 = vmatprep.mubr.f32.mxu0 %v3308_v3  ;;  %v177_v36 = vadd.f32 %v3676_v13, %v3393_v15 }
 0x930   :  { %1392 = vmatpush1.msra.mxu0 %v3484_v37 }
 0x931   :  { %1393 = vmatprep.subr.mxu0 %v3497_v39 }
 0x932   :  { %1394 = vmatpush1.msra.mxu0 %v3504_v40 }
 0x933   :  { %1395 = vmatprep.subr.mxu0 %v3513_v42 }
 0x934   :  { %1396 = vmatpush1.msra.mxu0 %v3520_v43 }
 0x935   :  { %1397 = vmatprep.subr.mxu0 %v3528_v44 }
 0x936   :  { %1398 = vmatpush1.msra.mxu0 %v3535_v45 }
 0x937   :  { %2978 = vmatprep.subr.mxu0 %v3308_v3 }
 0x994   :  { %v1061_v24 = vpop.permute.xlu1 %1060 }
 0x995   :  { %v1063_v26 = vmul.f32 %v3184_v53, %v1061_v24 }
 0x997   :  { %1237 = vrot.lane.b32.xlu1 %v1063_v26, %s3311_s12 }
 0x9e6   :  { %v1161_v28 = vpop.f32.mrf.mxu1  ;;  %v1232_v30 = vpop.f32.mrf.mxu0 }
 0x9e7   :  { %v1338_v31 = vadd.f32 %v1161_v28, %v175_v27 }
 0x9e8   :  { %v2947_v32 = vpop.f32.mrf.mxu0  ;;  %v1163_v34 = vpop.f32.mrf.mxu1 }
 0x9e9   :  { %v2664_v33 = vmul.f32 -1.442695, %v1338_v31  ;;  %v1339_v37 = vadd.f32 %v1163_v34, %v177_v36  ;;  %v3944_v31 = vld [vmem:[%s4348_s4 + $0x10] sm:$0xff]  ;;  %v3950_v32 = vld [vmem:[%s4349_s3 + $0x98] sm:$0xff]  ;;  %v3964_v34 = vld [vmem:[%s4349_s3 + $0x80] sm:$0xff] }
 0x9ea   :  { %v3971_v36 = vld [vmem:[%s4349_s3 + $0x78] sm:$0xff] }
 0x9eb   :  { %3191 = vpow2.f32 %v2664_v33  ;;  %v2665_v57 = vmul.f32 -1.442695, %v1339_v37  ;;  %v3957_v33 = vld [vmem:[%s4349_s3 + $0x90] sm:$0xff] }
 0x9ec   :  { %3193 = vtanh.f32 %v1339_v37  ;;  %v3985_v37 = vld [vmem:[%s4349_s3 + $0x60] sm:$0xff] }
 0x9f8   :  { %v3192_v39 = vpop.eup %3191 }
 0x9f9   :  { %v1343_v40 = vadd.f32 1.0, %v3192_v39  ;;  %v3194_v42 = vpop.eup %3193  ;;  %v3998_v39 = vld [vmem:[%s4349_s3 + $0x48] sm:$0xff] }
 0x9fb   :  { %3195 = vrcp.f32 %v1343_v40  ;;  %v4004_v40 = vld [vmem:[%s4349_s3 + $0x38] sm:$0xff] }
 0xa08   :  { %v3196_v6 = vpop.eup %3195 }
 0xa09   :  { %v3884_v21 = vpop.permute.xlu1 %1237  ;;  %v1354_v12 = vmul.f32 %v3196_v6, %v3194_v42  ;;  %v1353_v41 = vmul.f32 %v3196_v6, %v3841_v51  ;;  %v4010_v42 = vld [vmem:[%s4349_s3 + $0x30] sm:$0xff]  ;;  %v4016_v6 = vld [vmem:[%s4349_s3 + $0x20] sm:$0xff] }
 0xa0a   :  { %2957 = vmatmul.mubr.msk.f32.vlgmr.msra.gmra.mxu1 %vm421_vm3, %v3884_v21 }
 0xa0b   :  { %2960 = vmatpush3.msra.mxu1 %v3572_v59  ;;  %2975 = vmatprep.mubr.msk.f32.mxu1 %vm3310_vm1, %v3308_v3 }
 0xa0c   :  { %2961 = vmatprep.subr.mxu1 %v3308_v3 }
 0xa0d   :  { %2962 = vmatpush3.msra.mxu1 %v3580_v60 }
 0xa0e   :  { %2963 = vmatprep.subr.mxu1 %v3308_v3 }
 0xa0f   :  { %2964 = vmatpush3.msra.mxu1 %v3589_v61 }
 0xa10   :  { %2965 = vmatprep.subr.mxu1 %v3308_v3 }
 0xa11   :  { %2966 = vmatpush3.msra.mxu1 %v3596_v62 }
 0xa12   :  { %2967 = vmatprep.subr.mxu1 %v3308_v3 }
 0xa13   :  { %2968 = vmatpush3.msra.mxu1 %v3603_v63 }
 0xa14   :  { %2969 = vmatprep.subr.mxu1 %v3308_v3 }
 0xa15   :  { %2970 = vmatpush3.msra.mxu1 %v3610_v0 }
 0xa16   :  { %2971 = vmatprep.subr.mxu1 %v3308_v3 }
 0xa17   :  { %2972 = vmatpush3.msra.mxu1 %v3617_v1 }
 0xa18   :  { %2973 = vmatprep.subr.mxu1 %v3308_v3 }
 0xa19   :  { %2974 = vmatpush3.msra.mxu1 %v3624_v2 }
 0xa1a   :  { %1655 = vmatprep.subr.mxu1 %v3415_v25 }
 0xaca   :  { %v1307_v13 = vpop.f32.mrf.mxu1 }
 0xacb   :  { %v1308_v58 = vadd.f32 %v3694_v46, %v1307_v13 }
 0xacc   :  { %v2958_v29 = vpop.f32.mrf.mxu1 }
 0xacd   :  { %v1311_v47 = vadd.f32 %v1308_v58, %v1232_v30  ;;  %v3929_v30 = vld [vmem:[%s4348_s4 + $0x18] sm:$0xff] }
 0xacf   :  { %3197 = vtanh.f32 %v1311_v47  ;;  %v2663_v55 = vmul.f32 -1.442695, %v1311_v47 }
 0xad1   :  { %3199 = vpow2.f32 %v2663_v55 }
 0xad2   :  { %3201 = vpow2.f32 %v2665_v57 }
 0xadc   :  { %v3198_v49 = vpop.eup %3197 }
 0xadd   :  { %1321 = vrot.lane.b32.xlu0 %v3198_v49, %s3309_s1 }
 0xade   :  { %v3200_v53 = vpop.eup %3199 }
 0xadf   :  { %v1315_v35 = vadd.f32 1.0, %v3200_v53  ;;  %v3202_v7 = vpop.eup %3201 }
 0xae0   :  { %v1350_v9 = vadd.f32 1.0, %v3202_v7 }
 0xae1   :  { %1356 = vrot.lane.b32.xlu0 %v1354_v12, %s3309_s1  ;;  %3203 = vrcp.f32 %v1315_v35 }
 0xae2   :  { %3205 = vrcp.f32 %v1350_v9 }
 0xaee   :  { %v3909_v25 = vpop.eup %3203 }
 0xaef   :  { %v3206_v23 = vpop.eup %3205  ;;  %v1319_v24 = vmul.f32 %v3909_v25, %v3846_v56  ;;  %v3938_v56 = vld [vmem:[%s4349_s3 + $0xa8] sm:$0xff] }
 0xb4f   :  { %v1322_v48 = vpop.permute.xlu0 %1321 }
 0xb50   :  { %v1324_v50 = vmul.f32 %v3909_v25, %v1322_v48 }
 0xb52   :  { %1326 = vrot.lane.b32.xlu1 %v1324_v50, %s3311_s12 }
 0xb53   :  { %v1357_v11 = vpop.permute.xlu0 %1356 }
 0xb54   :  { %v3914_v5 = vadd.f32 %v1357_v11, %v1353_v41 }
 0xb56   :  { %3207 = vtanh.f32 %v3914_v5 }
 0xb63   :  { %v3208_v22 = vpop.eup %3207 }
 0xb64   :  { %v1361_v8 = vmul.f32 %v3208_v22, %v3206_v23 }
 0xb66   :  { %1363 = vrot.lane.b32.xlu0 %v1361_v8, %s3309_s1 }
 0xbc4   :  { %v1327_v26 = vpop.permute.xlu1 %1326 }
 0xbc5   :  { %v3920_v27 = vadd.f32 %v1327_v26, %v1319_v24 }
 0xbc7   :  { %3209 = vtanh.f32 %v3920_v27 }
 0xbd4   :  { %v3210_v51 = vpop.eup %3209 }
 0xbd5   :  { %1332 = vrot.lane.b32.xlu1 %v3210_v51, %s3309_s1 }
 0xbd8   :  { %v1364_v28 = vpop.permute.xlu0 %1363 }
 0xbd9   :  { %2666 = vmatmul.mubr.msk.f32.vlgmr.msra.gmra.mxu0 %vm271_vm2, %v1364_v28  ;;  %2976 = vmatmul.mubr.msk.f32.vlgmr.msra.gmra.mxu1 %vm271_vm2, %v1364_v28 }
 0xbda   :  { %2979 = vmatpush3.msra.mxu0 %v3929_v30  ;;  %2986 = vmatprep.mubr.msk.f32.mxu0 %vm3310_vm1, %v3308_v3 }
 0xbdb   :  { %2980 = vmatprep.subr.mxu0 %v3308_v3  ;;  %1656 = vmatpush1.msra.mxu1 %v3938_v56 }
 0xbdc   :  { %2981 = vmatpush3.msra.mxu0 %v3944_v31  ;;  %1657 = vmatprep.subr.mxu1 %v3950_v32 }
 0xbdd   :  { %2982 = vmatprep.subr.mxu0 %v3308_v3  ;;  %1658 = vmatpush1.msra.mxu1 %v3957_v33 }
 0xbde   :  { %2983 = vmatpush3.msra.mxu0 %v3490_v38  ;;  %1659 = vmatprep.subr.mxu1 %v3964_v34  ;;  %v3978_v38 = vld [vmem:[%s4349_s3 + $0x68] sm:$0xff] }
 0xbdf   :  { %2984 = vmatprep.subr.mxu0 %v3308_v3  ;;  %1660 = vmatpush1.msra.mxu1 %v3971_v36 }
 0xbe0   :  { %2985 = vmatpush3.msra.mxu0 %v3559_v54  ;;  %1661 = vmatprep.subr.mxu1 %v3978_v38  ;;  %v3991_v54 = vld [vmem:[%s4349_s3 + $0x50] sm:$0xff] }
 0xbe1   :  { %2989 = vmatprep.subr.mxu0 %v3308_v3  ;;  %1662 = vmatpush1.msra.mxu1 %v3985_v37 }
 0xbe2   :  { %1663 = vmatprep.subr.mxu1 %v3991_v54  ;;  %1703 = vmatprep.mubr.f32.mxu1 %v3308_v3 }
 0xbe3   :  { %1664 = vmatpush1.msra.mxu1 %v3998_v39 }
 0xbe4   :  { %1665 = vmatprep.subr.mxu1 %v4004_v40 }
 0xbe5   :  { %1666 = vmatpush1.msra.mxu1 %v4010_v42 }
 0xbe6   :  { %1667 = vmatprep.subr.mxu1 %v4016_v6 }
 0xbe7   :  { %1668 = vmatpush1.msra.mxu1 %v3520_v43  ;;  %v3293_v43 = vld [vmem:[%s4349_s3 + $0xb0] sm:$0xff] }
 0xbe8   :  { %1669 = vmatprep.subr.mxu1 %v3528_v44 }
 0xbe9   :  { %1670 = vmatpush1.msra.mxu1 %v3535_v45  ;;  %v181_v45 = vadd.f32 %v3678_v14, %v3390_v10 }
 0xbea   :  { %3008 = vmatprep.subr.mxu1 %v3308_v3 }
 0xc47   :  { %v1333_v12 = vpop.permute.xlu1 %1332 }
 0xc48   :  { %v1335_v13 = vmul.f32 %v3909_v25, %v1333_v12 }
 0xc4a   :  { %1509 = vrot.lane.b32.xlu1 %v1335_v13, %s3311_s12 }
 0xc99   :  { %v1504_v58 = vpop.f32.mrf.mxu1  ;;  %v1433_v44 = vpop.f32.mrf.mxu0 }
 0xc9b   :  { %v2977_v29 = vpop.f32.mrf.mxu1 }
 0xcbc   :  { %v4025_v47 = vpop.permute.xlu1 %1509 }
 0xcbd   :  { %2987 = vmatmul.mubr.msk.f32.vlgmr.msra.gmra.mxu0 %vm421_vm3, %v4025_v47 }
 0xcbe   :  { %2990 = vmatpush3.msra.mxu0 %v3572_v59  ;;  %3005 = vmatprep.mubr.msk.f32.mxu0 %vm3310_vm1, %v3308_v3  ;;  %v1610_v59 = vadd.f32 %v1433_v44, %v181_v45  ;;  %v189_v44 = vadd.f32 %v3684_v18, %v3393_v15  ;;  %v4133_v18 = vld [vmem:[%s4349_s3 + $0xa0] sm:$0xff] }
 0xcbf   :  { %2991 = vmatprep.subr.mxu0 %v3308_v3 }
 0xcc0   :  { %2992 = vmatpush3.msra.mxu0 %v3580_v60  ;;  %v2670_v60 = vmul.f32 -1.442695, %v1610_v59 }
 0xcc1   :  { %2993 = vmatprep.subr.mxu0 %v3308_v3 }
 0xcc2   :  { %2994 = vmatpush3.msra.mxu0 %v3589_v61  ;;  %3211 = vpow2.f32 %v2670_v60 }
 0xcc3   :  { %2995 = vmatprep.subr.mxu0 %v3308_v3 }
 0xcc4   :  { %2996 = vmatpush3.msra.mxu0 %v3596_v62  ;;  %v1435_v62 = vpop.f32.mrf.mxu0 }
 0xcc5   :  { %2997 = vmatprep.subr.mxu0 %v3308_v3 }
 0xcc6   :  { %2998 = vmatpush3.msra.mxu0 %v3603_v63 }
 0xcc7   :  { %2999 = vmatprep.subr.mxu0 %v3308_v3 }
 0xcc8   :  { %3000 = vmatpush3.msra.mxu0 %v3610_v0 }
 0xcc9   :  { %3001 = vmatprep.subr.mxu0 %v3308_v3 }
 0xcca   :  { %3002 = vmatpush3.msra.mxu0 %v3617_v1  ;;  %v183_v1 = vadd.f32 %v3680_v16, %v3393_v15 }
 0xccb   :  { %3003 = vmatprep.subr.mxu0 %v3308_v3 }
 0xccc   :  { %3004 = vmatpush3.msra.mxu0 %v3624_v2  ;;  %v1611_v55 = vadd.f32 %v1435_v62, %v183_v1  ;;  %v4140_v1 = vld [vmem:[%s4349_s3 + $0x88] sm:$0xff] }
 0xccd   :  { %1927 = vmatprep.subr.mxu0 %v3293_v43 }
 0xcce   :  { %v2671_v16 = vmul.f32 -1.442695, %v1611_v55 }
 0xccf   :  { %v3212_v61 = vpop.eup %3211 }
 0xcd0   :  { %v1615_v63 = vadd.f32 1.0, %v3212_v61 }
 0xcd2   :  { %3213 = vrcp.f32 %v1615_v63 }
 0xcdf   :  { %v3214_v57 = vpop.eup %3213 }
 0xce0   :  { %v1625_v22 = vmul.f32 %v3214_v57, %v3914_v5 }
 0xd7d   :  { %v1579_v0 = vpop.f32.mrf.mxu0 }
 0xd7e   :  { %v1580_v2 = vadd.f32 %v3694_v46, %v1579_v0  ;;  %v4124_v0 = vld [vmem:[%s4349_s3 + $0xb8] sm:$0xff] }
 0xd7f   :  { %v2988_v49 = vpop.f32.mrf.mxu0 }
 0xd80   :  { %v1583_v53 = vadd.f32 %v1580_v2, %v1504_v58  ;;  %v4147_v2 = vld [vmem:[%s4349_s3 + $0x70] sm:$0xff]  ;;  %v4154_v49 = vld [vmem:[%s4349_s3 + $0x58] sm:$0xff] }
 0xd82   :  { %3215 = vtanh.f32 %v1583_v53  ;;  %v2669_v25 = vmul.f32 -1.442695, %v1583_v53  ;;  %v4168_v53 = vld [vmem:[%s4349_s3 + $0x28] sm:$0xff] }
 0xd83   :  { %3217 = vtanh.f32 %v1611_v55  ;;  %v4161_v55 = vld [vmem:[%s4349_s3 + $0x40] sm:$0xff] }
 0xd84   :  { %3219 = vpow2.f32 %v2669_v25 }
 0xd85   :  { %3221 = vpow2.f32 %v2671_v16 }
 0xd8f   :  { %v3216_v14 = vpop.eup %3215 }
 0xd90   :  { %1593 = vrot.lane.b32.xlu0 %v3216_v14, %s3309_s1  ;;  %v3218_v35 = vpop.eup %3217 }
 0xd91   :  { %v1626_v7 = vmul.f32 %v3218_v35, %v3214_v57  ;;  %v3220_v48 = vpop.eup %3219  ;;  %v4175_v57 = vld [vmem:[%s4349_s3 + $0x10] sm:$0xff]  ;;  %v4182_v35 = vld [vmem:[%s4350_s5] ss:$0 sm:$0xff] }
 0xd92   :  { %v1587_v50 = vadd.f32 1.0, %v3220_v48  ;;  %v3222_v46 = vpop.eup %3221 }
 0xd93   :  { %v1622_v23 = vadd.f32 1.0, %v3222_v46 }
 0xd94   :  { %1628 = vrot.lane.b32.xlu0 %v1626_v7, %s3309_s1  ;;  %3223 = vrcp.f32 %v1587_v50 }
 0xd95   :  { %3225 = vrcp.f32 %v1622_v23 }
 0xda1   :  { %v3224_v9 = vpop.eup %3223 }
 0xda2   :  { %v3226_v26 = vpop.eup %3225  ;;  %v1591_v12 = vmul.f32 %v3224_v9, %v3920_v27  ;;  %v4081_v27 = vld [vmem:[%s4348_s4 + $0x8] sm:$0xff] }
 0xe02   :  { %v1594_v41 = vpop.permute.xlu0 %1593 }
 0xe03   :  { %v1596_v11 = vmul.f32 %v3224_v9, %v1594_v41 }
 0xe05   :  { %1598 = vrot.lane.b32.xlu1 %v1596_v11, %s3311_s12 }
 0xe06   :  { %v1629_v8 = vpop.permute.xlu0 %1628 }
 0xe07   :  { %v4058_v24 = vadd.f32 %v1629_v8, %v1625_v22 }
 0xe09   :  { %3227 = vtanh.f32 %v4058_v24 }
 0xe16   :  { %v3228_v51 = vpop.eup %3227 }
 0xe17   :  { %v1633_v28 = vmul.f32 %v3228_v51, %v3226_v26 }
 0xe19   :  { %1635 = vrot.lane.b32.xlu0 %v1633_v28, %s3309_s1 }
 0xe77   :  { %v1599_v13 = vpop.permute.xlu1 %1598 }
 0xe78   :  { %v4063_v58 = vadd.f32 %v1599_v13, %v1591_v12 }
 0xe7a   :  { %3229 = vtanh.f32 %v4063_v58 }
 0xe87   :  { %v3230_v29 = vpop.eup %3229 }
 0xe88   :  { %1604 = vrot.lane.b32.xlu1 %v3230_v29, %s3309_s1 }
 0xe8b   :  { %v1636_v5 = vpop.permute.xlu0 %1635 }
 0xe8c   :  { %2672 = vmatmul.mubr.msk.f32.vlgmr.msra.gmra.mxu1 %vm271_vm2, %v1636_v5  ;;  %3006 = vmatmul.mubr.msk.f32.vlgmr.msra.gmra.mxu0 %vm271_vm2, %v1636_v5 }
 0xe8d   :  { %3009 = vmatpush3.msra.mxu1 %v3929_v30  ;;  %3016 = vmatprep.mubr.msk.f32.mxu1 %vm3310_vm1, %v3308_v3 }
 0xe8e   :  { %3010 = vmatprep.subr.mxu1 %v3308_v3  ;;  %1928 = vmatpush1.msra.mxu0 %v3938_v56  ;;  %v4090_v56 = vld [vmem:[%s4348_s4] sm:$0xff] }
 0xe8f   :  { %3011 = vmatpush3.msra.mxu1 %v3944_v31  ;;  %1929 = vmatprep.subr.mxu0 %v3950_v32  ;;  %v3296_v32 = vld [vmem:[%s4349_s3 + $0x18] sm:$0xff] }
 0xe90   :  { %3012 = vmatprep.subr.mxu1 %v3308_v3  ;;  %1930 = vmatpush1.msra.mxu0 %v3957_v33  ;;  %v3297_v33 = vld [vmem:[%s4349_s3 + $0x8] sm:$0xff] }
 0xe91   :  { %3013 = vmatpush3.msra.mxu1 %v4081_v27  ;;  %1931 = vmatprep.subr.mxu0 %v3964_v34  ;;  %v3298_v34 = vld [vmem:[%s4349_s3] sm:$0xff] }
 0xe92   :  { %3014 = vmatprep.subr.mxu1 %v3308_v3  ;;  %1932 = vmatpush1.msra.mxu0 %v3971_v36 }
 0xe93   :  { %3015 = vmatpush3.msra.mxu1 %v4090_v56  ;;  %1933 = vmatprep.subr.mxu0 %v3978_v38 }
 0xe94   :  { %3019 = vmatprep.subr.mxu1 %v3308_v3  ;;  %1934 = vmatpush1.msra.mxu0 %v3985_v37  ;;  %v187_v37 = vadd.f32 %v3682_v17, %v3390_v10 }
 0xe95   :  { %1935 = vmatprep.subr.mxu0 %v3991_v54  ;;  %1975 = vmatprep.mubr.f32.mxu0 %v3308_v3 }
 0xe96   :  { %1936 = vmatpush1.msra.mxu0 %v3998_v39 }
 0xe97   :  { %1937 = vmatprep.subr.mxu0 %v4004_v40 }
 0xe98   :  { %1938 = vmatpush1.msra.mxu0 %v4010_v42 }
 0xe99   :  { %1939 = vmatprep.subr.mxu0 %v4016_v6 }
 0xe9a   :  { %1940 = vmatpush1.msra.mxu0 %v3296_v32 }
 0xe9b   :  { %1941 = vmatprep.subr.mxu0 %v3297_v33 }
 0xe9c   :  { %1942 = vmatpush1.msra.mxu0 %v3298_v34 }
 0xe9d   :  { %3038 = vmatprep.subr.mxu0 %v3308_v3 }
 0xefa   :  { %v1605_v36 = vpop.permute.xlu1 %1604 }
 0xefb   :  { %v1607_v38 = vmul.f32 %v3224_v9, %v1605_v36 }
 0xefd   :  { %1781 = vrot.lane.b32.xlu1 %v1607_v38, %s3311_s12 }
 0xf4c   :  { %v1705_v54 = vpop.f32.mrf.mxu1  ;;  %v1776_v39 = vpop.f32.mrf.mxu0 }
 0xf4d   :  { %v1882_v40 = vadd.f32 %v1705_v54, %v187_v37  ;;  %v193_v37 = vadd.f32 %v3686_v19, %v3390_v10 }
 0xf4e   :  { %v3007_v42 = vpop.f32.mrf.mxu0  ;;  %v1707_v43 = vpop.f32.mrf.mxu1 }
 0xf4f   :  { %v2676_v6 = vmul.f32 -1.442695, %v1882_v40  ;;  %v1883_v45 = vadd.f32 %v1707_v43, %v189_v44  ;;  %v195_v44 = vadd.f32 %v3688_v20, %v3393_v15 }
 0xf51   :  { %3231 = vpow2.f32 %v2676_v6  ;;  %v2677_v9 = vmul.f32 -1.442695, %v1883_v45 }
 0xf52   :  { %3233 = vtanh.f32 %v1883_v45 }
 0xf5e   :  { %v3232_v59 = vpop.eup %3231 }
 0xf5f   :  { %v1887_v60 = vadd.f32 1.0, %v3232_v59  ;;  %v3234_v61 = vpop.eup %3233 }
 0xf61   :  { %3235 = vrcp.f32 %v1887_v60 }
 0xf6e   :  { %v3236_v62 = vpop.eup %3235 }
 0xf6f   :  { %v4117_v63 = vpop.permute.xlu1 %1781  ;;  %v1898_v17 = vmul.f32 %v3236_v62, %v3234_v61  ;;  %v1897_v51 = vmul.f32 %v3236_v62, %v4058_v24 }
 0xf70   :  { %3017 = vmatmul.mubr.msk.f32.vlgmr.msra.gmra.mxu1 %vm421_vm3, %v4117_v63 }
 0xf71   :  { %3020 = vmatpush3.msra.mxu1 %v4124_v0  ;;  %3035 = vmatprep.mubr.msk.f32.mxu1 %vm3310_vm1, %v3308_v3 }
 0xf72   :  { %3021 = vmatprep.subr.mxu1 %v3308_v3 }
 0xf73   :  { %3022 = vmatpush3.msra.mxu1 %v4133_v18 }
 0xf74   :  { %3023 = vmatprep.subr.mxu1 %v3308_v3 }
 0xf75   :  { %3024 = vmatpush3.msra.mxu1 %v4140_v1 }
 0xf76   :  { %3025 = vmatprep.subr.mxu1 %v3308_v3 }
 0xf77   :  { %3026 = vmatpush3.msra.mxu1 %v4147_v2 }
 0xf78   :  { %3027 = vmatprep.subr.mxu1 %v3308_v3 }
 0xf79   :  { %3028 = vmatpush3.msra.mxu1 %v4154_v49 }
 0xf7a   :  { %3029 = vmatprep.subr.mxu1 %v3308_v3 }
 0xf7b   :  { %3030 = vmatpush3.msra.mxu1 %v4161_v55 }
 0xf7c   :  { %3031 = vmatprep.subr.mxu1 %v3308_v3 }
 0xf7d   :  { %3032 = vmatpush3.msra.mxu1 %v4168_v53 }
 0xf7e   :  { %3033 = vmatprep.subr.mxu1 %v3308_v3 }
 0xf7f   :  { %3034 = vmatpush3.msra.mxu1 %v4175_v57 }
 0xf80   :  { %3049 = vmatprep.subr.mxu1 %v3308_v3 }
0x1030   :  { %v1851_v14 = vpop.f32.mrf.mxu1 }
0x1031   :  { %v1852_v7 = vadd.f32 %v4182_v35, %v1851_v14 }
0x1032   :  { %v3018_v25 = vpop.f32.mrf.mxu1 }
0x1033   :  { %v1855_v48 = vadd.f32 %v1852_v7, %v1776_v39 }
0x1035   :  { %3237 = vtanh.f32 %v1855_v48  ;;  %v2675_v50 = vmul.f32 -1.442695, %v1855_v48 }
0x1037   :  { %3239 = vpow2.f32 %v2675_v50 }
0x1038   :  { %3241 = vpow2.f32 %v2677_v9  ;;  %v2356_v9 = vld [vmem:[%s4351_s6 + $0x18] sm:$0xff] }
0x1042   :  { %v3238_v16 = vpop.eup %3237 }
0x1043   :  { %1865 = vrot.lane.b32.xlu0 %v3238_v16, %s3309_s1 }
0x1044   :  { %v3240_v46 = vpop.eup %3239 }
0x1045   :  { %v1859_v41 = vadd.f32 1.0, %v3240_v46  ;;  %v3242_v11 = vpop.eup %3241 }
0x1046   :  { %v1894_v26 = vadd.f32 1.0, %v3242_v11 }
0x1047   :  { %1900 = vrot.lane.b32.xlu0 %v1898_v17, %s3309_s1  ;;  %3243 = vrcp.f32 %v1859_v41 }
0x1048   :  { %3245 = vrcp.f32 %v1894_v26  ;;  %v2355_v26 = vld [vmem:[%s4351_s6 + $0x10] sm:$0xff] }
0x1054   :  { %v3244_v23 = vpop.eup %3243 }
0x1055   :  { %v3246_v13 = vpop.eup %3245  ;;  %v1863_v32 = vmul.f32 %v3244_v23, %v4063_v58 }
0x10b5   :  { %v1866_v22 = vpop.permute.xlu0 %1865 }
0x10b6   :  { %v1868_v8 = vmul.f32 %v3244_v23, %v1866_v22 }
0x10b8   :  { %1870 = vrot.lane.b32.xlu1 %v1868_v8, %s3311_s12 }
0x10b9   :  { %v1901_v28 = vpop.permute.xlu0 %1900 }
0x10ba   :  { %v4189_v12 = vadd.f32 %v1901_v28, %v1897_v51  ;;  %v2354_v51 = vld [vmem:[%s4351_s6 + $0x8] sm:$0xff]  ;;  %v2353_v28 = vld [vmem:[%s4351_s6] sm:$0xff] }
0x10bc   :  { %3247 = vtanh.f32 %v4189_v12 }
0x10c9   :  { %v3248_v29 = vpop.eup %3247 }
0x10ca   :  { %v1905_v5 = vmul.f32 %v3248_v29, %v3246_v13 }
0x10cc   :  { %1907 = vrot.lane.b32.xlu0 %v1905_v5, %s3309_s1  ;;  %v4294_v5 = vld [vmem:[%s4353_s7] ss:$0 sm:$0xff] }
0x112a   :  { %v1871_v33 = vpop.permute.xlu1 %1870 }
0x112b   :  { %v4194_v34 = vadd.f32 %v1871_v33, %v1863_v32 }
0x112d   :  { %3249 = vtanh.f32 %v4194_v34 }
0x113a   :  { %v3250_v36 = vpop.eup %3249 }
0x113b   :  { %1876 = vrot.lane.b32.xlu1 %v3250_v36, %s3309_s1 }
0x113e   :  { %v1908_v24 = vpop.permute.xlu0 %1907 }
0x113f   :  { %2678 = vmatmul.mubr.msk.f32.vlgmr.msra.gmra.mxu0 %vm271_vm2, %v1908_v24  ;;  %3036 = vmatmul.mubr.msk.f32.vlgmr.msra.gmra.mxu1 %vm271_vm2, %v1908_v24 }
0x1140   :  { %3039 = vmatpush3.msra.mxu0 %v3929_v30  ;;  %3046 = vmatprep.mubr.msk.f32.mxu0 %vm3310_vm1, %v3308_v3 }
0x1141   :  { %3040 = vmatprep.subr.mxu0 %v3308_v3  ;;  %3050 = vmatpush3.msra.mxu1 %v4124_v0 }
0x1142   :  { %3041 = vmatpush3.msra.mxu0 %v3944_v31  ;;  %3051 = vmatprep.subr.mxu1 %v3308_v3 }
0x1143   :  { %3042 = vmatprep.subr.mxu0 %v3308_v3  ;;  %3052 = vmatpush3.msra.mxu1 %v4133_v18 }
0x1144   :  { %3043 = vmatpush3.msra.mxu0 %v4081_v27  ;;  %3053 = vmatprep.subr.mxu1 %v3308_v3 }
0x1145   :  { %3044 = vmatprep.subr.mxu0 %v3308_v3  ;;  %3054 = vmatpush3.msra.mxu1 %v4140_v1 }
0x1146   :  { %3045 = vmatpush3.msra.mxu0 %v4090_v56  ;;  %3055 = vmatprep.subr.mxu1 %v3308_v3 }
0x1147   :  { %3056 = vmatpush3.msra.mxu1 %v4147_v2  ;;  %3065 = vmatprep.mubr.msk.f32.mxu1 %vm3310_vm1, %v3308_v3 }
0x1148   :  { %3057 = vmatprep.subr.mxu1 %v3308_v3  ;;  %3068 = vmatprep.subr.mxu0 %v3308_v3 }
0x1149   :  { %3058 = vmatpush3.msra.mxu1 %v4154_v49 }
0x114a   :  { %3059 = vmatprep.subr.mxu1 %v3308_v3 }
0x114b   :  { %3060 = vmatpush3.msra.mxu1 %v4161_v55 }
0x114c   :  { %3061 = vmatprep.subr.mxu1 %v3308_v3 }
0x114d   :  { %3062 = vmatpush3.msra.mxu1 %v4168_v53 }
0x114e   :  { %3063 = vmatprep.subr.mxu1 %v3308_v3 }
0x114f   :  { %3064 = vmatpush3.msra.mxu1 %v4175_v57 }
0x11ad   :  { %v1877_v58 = vpop.permute.xlu1 %1876 }
0x11ae   :  { %v1879_v38 = vmul.f32 %v3244_v23, %v1877_v58 }
0x11b0   :  { %2053 = vrot.lane.b32.xlu1 %v1879_v38, %s3311_s12 }
0x11ff   :  { %v1977_v54 = vpop.f32.mrf.mxu0  ;;  %v2048_v39 = vpop.f32.mrf.mxu1 }
0x1200   :  { %v2154_v40 = vadd.f32 %v1977_v54, %v193_v37 }
0x1201   :  { %v3037_v42 = vpop.f32.mrf.mxu1  ;;  %v1979_v43 = vpop.f32.mrf.mxu0 }
0x1202   :  { %v2682_v6 = vmul.f32 -1.442695, %v2154_v40  ;;  %v2155_v45 = vadd.f32 %v1979_v43, %v195_v44 }
0x1204   :  { %3251 = vpow2.f32 %v2682_v6  ;;  %v2683_v1 = vmul.f32 -1.442695, %v2155_v45 }
0x1205   :  { %3253 = vtanh.f32 %v2155_v45 }
0x1211   :  { %v3252_v59 = vpop.eup %3251 }
0x1212   :  { %v2159_v60 = vadd.f32 1.0, %v3252_v59  ;;  %v3254_v61 = vpop.eup %3253 }
0x1214   :  { %3255 = vrcp.f32 %v2159_v60 }
0x1221   :  { %v3256_v62 = vpop.eup %3255 }
0x1222   :  { %v4232_v17 = vpop.permute.xlu1 %2053  ;;  %v2170_v10 = vmul.f32 %v3256_v62, %v3254_v61  ;;  %v2169_v53 = vmul.f32 %v3256_v62, %v4189_v12 }
0x1223   :  { %3047 = vmatmul.mubr.msk.f32.vlgmr.msra.gmra.mxu0 %vm421_vm3, %v4232_v17 }
0x1224   :  { %3069 = vmatpush3.msra.mxu0 %v3929_v30  ;;  %3076 = vmatprep.mubr.msk.f32.mxu0 %vm3310_vm1, %v3308_v3 }
0x1225   :  { %3070 = vmatprep.subr.mxu0 %v3308_v3 }
0x1226   :  { %3071 = vmatpush3.msra.mxu0 %v3944_v31 }
0x1227   :  { %3072 = vmatprep.subr.mxu0 %v3308_v3 }
0x1228   :  { %3073 = vmatpush3.msra.mxu0 %v4081_v27 }
0x1229   :  { %3074 = vmatprep.subr.mxu0 %v3308_v3 }
0x122a   :  { %3075 = vmatpush3.msra.mxu0 %v4090_v56 }
0x122b   :  { %3079 = vmatprep.subr.mxu0 %v2356_v9 }
0x12e3   :  { %v2123_v15 = vpop.f32.mrf.mxu0 }
0x12e4   :  { %v2124_v19 = vadd.f32 %v4182_v35, %v2123_v15 }
0x12e5   :  { %v3048_v20 = vpop.f32.mrf.mxu0 }
0x12e6   :  { %v2127_v30 = vadd.f32 %v2124_v19, %v2048_v39  ;;  %v2696_v20 = vld [vmem:[%s4354_s9] ss:$0 sm:$0xff] }
0x12e8   :  { %3257 = vtanh.f32 %v2127_v30  ;;  %v2681_v31 = vmul.f32 -1.442695, %v2127_v30 }
0x12ea   :  { %3259 = vpow2.f32 %v2681_v31 }
0x12eb   :  { %3261 = vpow2.f32 %v2683_v1 }
0x12f5   :  { %v3258_v0 = vpop.eup %3257 }
0x12f6   :  { %2137 = vrot.lane.b32.xlu0 %v3258_v0, %s3309_s1 }
0x12f7   :  { %v3260_v18 = vpop.eup %3259 }
0x12f8   :  { %v2131_v27 = vadd.f32 1.0, %v3260_v18  ;;  %v3262_v3 = vpop.eup %3261 }
0x12f9   :  { %v2166_v55 = vadd.f32 1.0, %v3262_v3 }
0x12fa   :  { %2172 = vrot.lane.b32.xlu0 %v2170_v10, %s3309_s1  ;;  %3263 = vrcp.f32 %v2131_v27 }
0x12fb   :  { %3265 = vrcp.f32 %v2166_v55 }
0x1307   :  { %v3264_v56 = vpop.eup %3263 }
0x1308   :  { %v3266_v7 = vpop.eup %3265  ;;  %v2135_v16 = vmul.f32 %v3264_v56, %v4194_v34 }
0x1368   :  { %v2138_v2 = vpop.permute.xlu0 %2137 }
0x1369   :  { %v2140_v49 = vmul.f32 %v3264_v56, %v2138_v2 }
0x136b   :  { %2142 = vrot.lane.b32.xlu1 %v2140_v49, %s3311_s12 }
0x136c   :  { %v2173_v57 = vpop.permute.xlu0 %2172 }
0x136d   :  { %v2175_v14 = vadd.f32 %v2173_v57, %v2169_v53 }
0x136f   :  { %3267 = vtanh.f32 %v2175_v14 }
0x137c   :  { %v3268_v25 = vpop.eup %3267 }
0x137d   :  { %v2177_v48 = vmul.f32 %v3268_v25, %v3266_v7 }
0x13dd   :  { %v2143_v50 = vpop.permute.xlu1 %2142 }
0x13de   :  { %v4251_v46 = vadd.f32 %v2143_v50, %v2135_v16 }
0x13e0   :  { %3269 = vtanh.f32 %v4251_v46 }
0x13ed   :  { %v3270_v41 = vpop.eup %3269 }
0x13ee   :  { %2148 = vrot.lane.b32.xlu1 %v3270_v41, %s3309_s1 }
0x13f2   :  { %2179 = vrot.lane.b32.xlu1 %v2177_v48, %s3309_s1 }
0x1460   :  { %v2149_v11 = vpop.permute.xlu1 %2148 }
0x1461   :  { %v2151_v23 = vmul.f32 %v3264_v56, %v2149_v11 }
0x1463   :  { %2254 = vrot.lane.b32.xlu0 %v2151_v23, %s3311_s12 }
0x1464   :  { %v2180_v22 = vpop.permute.xlu1 %2179 }
0x1465   :  { %3066 = vmatmul.mubr.msk.f32.vlgmr.msra.gmra.mxu1 %vm271_vm2, %v2180_v22 }
0x14d5   :  { %v2255_v8 = vpop.permute.xlu0 %2254 }
0x14d6   :  { %3077 = vmatmul.mubr.msk.f32.vlgmr.msra.gmra.mxu0 %vm421_vm3, %v2255_v8 }
0x14d7   :  { %3080 = vmatpush3.msra.mxu0 %v2356_v9  ;;  %3087 = vmatprep.mubr.msk.f32.mxu0 %vm421_vm3, %v3744_v4  ;;  %v2483_v4 = vld [vmem:[%s4352_s8 + $0x8] sm:$0xff] }
0x14d8   :  { %3081 = vmatprep.subr.mxu0 %v2355_v26  ;;  %3099 = vmatprep.subr.mxu1 %v2483_v4 }
0x14d9   :  { %3082 = vmatpush3.msra.mxu0 %v2355_v26  ;;  %3100 = vmatpush3.msra.mxu1 %v2483_v4 }
0x14da   :  { %3083 = vmatprep.subr.mxu0 %v2354_v51 }
0x14db   :  { %3084 = vmatpush3.msra.mxu0 %v2354_v51 }
0x14dc   :  { %3085 = vmatprep.subr.mxu0 %v2353_v28 }
0x14dd   :  { %3086 = vmatpush3.msra.mxu0 %v2353_v28 }
0x14de   :  { %3088 = vmatmul.mubr.msk.f32.vlgmr.msra.gmra.mxu0 %vm421_vm3, %v3814_v52  ;;  %v2482_v52 = vld [vmem:[%s4352_s8] sm:$0xff] }
0x14df   :  { %3090 = vmatprep.mubr.msk.f32.mxu0 %vm421_vm3, %v3884_v21  ;;  %3101 = vmatprep.subr.mxu1 %v2482_v52 }
0x14e0   :  { %3102 = vmatpush3.msra.mxu1 %v2482_v52 }
0x14e2   :  { %3091 = vmatmul.mubr.msk.f32.gmra.mxu0 %vm421_vm3, %v4025_v47 }
0x14e3   :  { %3093 = vmatprep.mubr.msk.f32.mxu0 %vm421_vm3, %v4117_v63 }
0x14e6   :  { %3094 = vmatmul.mubr.msk.f32.gmra.mxu0 %vm421_vm3, %v4232_v17 }
0x14e7   :  { %3096 = vmatprep.mubr.msk.f32.mxu0 %vm421_vm3, %v2255_v8 }
0x1525   :  { %v2249_v21 = vpop.f32.mrf.mxu1 }
0x1527   :  { %v3067_v47 = vpop.f32.mrf.mxu1 }
0x1596   :  { %v2324_v63 = vpop.f32.mrf.mxu0 }
0x1597   :  { %v2325_v12 = vadd.f32 %v4182_v35, %v2324_v63 }
0x1598   :  { %v3078_v13 = vpop.f32.mrf.mxu0 }
0x1599   :  { %v2328_v29 = vadd.f32 %v2325_v12, %v2249_v21 }
0x159b   :  { %3271 = vtanh.f32 %v2328_v29  ;;  %v2686_v61 = vmul.f32 -1.442695, %v2328_v29 }
0x159d   :  { %3273 = vpow2.f32 %v2686_v61 }
0x159e   :  { %v3089_v32 = vpop.f32.mrf.mxu0 }
0x159f   :  { %v2441_v33 = vadd.f32 %v3089_v32, %v4294_v5 }
0x15a0   :  { %v2435_v34 = vpop.f32.mrf.mxu0 }
0x15a1   :  { %v2436_v36 = vadd.f32 %v4294_v5, %v2435_v34  ;;  %v2475_v38 = vmax.f32 %v2441_v33, 0.0 }
0x15a2   :  { %v3092_v24 = vpop.f32.mrf.mxu0 }
0x15a3   :  { %v2474_v58 = vmax.f32 %v2436_v36, 0.0  ;;  %v2451_v37 = vadd.f32 %v3092_v24, %v4294_v5 }
0x15a4   :  { %v2445_v35 = vpop.f32.mrf.mxu0 }
0x15a5   :  { %v2446_v54 = vadd.f32 %v4294_v5, %v2445_v35  ;;  %3103 = vmatprep.mubr.msk.f32.mxu1 %vm59_vm0, %v2474_v58  ;;  %v2477_v6 = vmax.f32 %v2451_v37, 0.0 }
0x15a6   :  { %v3095_v39 = vpop.f32.mrf.mxu0  ;;  %3104 = vmatmul.mubr.msk.f32.vlgmr.msra.gmra.mxu1 %vm59_vm0, %v2475_v38 }
0x15a7   :  { %v2476_v40 = vmax.f32 %v2446_v54, 0.0  ;;  %v2461_v43 = vadd.f32 %v3095_v39, %v4294_v5 }
0x15a8   :  { %v3272_v42 = vpop.eup %3271  ;;  %v2455_v44 = vpop.f32.mrf.mxu0 }
0x15a9   :  { %v2456_v45 = vadd.f32 %v4294_v5, %v2455_v44  ;;  %3106 = vmatprep.mubr.msk.f32.mxu1 %vm59_vm0, %v2476_v40  ;;  %2338 = vrot.lane.b32.xlu0 %v3272_v42, %s3309_s1  ;;  %v2479_v60 = vmax.f32 %v2461_v43, 0.0 }
0x15aa   :  { %3107 = vmatmul.mubr.msk.f32.gmra.mxu1 %vm59_vm0, %v2477_v6  ;;  %v3274_v62 = vpop.eup %3273 }
0x15ab   :  { %v2478_v59 = vmax.f32 %v2456_v45, 0.0  ;;  %v2332_v17 = vadd.f32 1.0, %v3274_v62 }
0x15ad   :  { %3109 = vmatprep.mubr.msk.f32.mxu1 %vm59_vm0, %v2478_v59  ;;  %3275 = vrcp.f32 %v2332_v17 }
0x15ae   :  { %3110 = vmatmul.mubr.msk.f32.gmra.mxu1 %vm59_vm0, %v2479_v60 }
0x15ba   :  { %v3276_v10 = vpop.eup %3275 }
0x15bb   :  { %v2336_v57 = vmul.f32 %v3276_v10, %v4251_v46 }
0x161b   :  { %v2339_v15 = vpop.permute.xlu0 %2338 }
0x161c   :  { %v2341_v19 = vmul.f32 %v3276_v10, %v2339_v15 }
0x161e   :  { %2343 = vrot.lane.b32.xlu1 %v2341_v19, %s3311_s12 }
0x1666   :  { %v3105_v30 = vpop.f32.mrf.mxu1 }
0x1667   :  { %v2587_v0 = vadd.f32 %v3105_v30, %v2696_v20 }
0x1668   :  { %v2581_v31 = vpop.f32.mrf.mxu1 }
0x1669   :  { %2621 = vst [vmem:[%s4355_s10 + $0x8] sm:$0xff] %v2587_v0  ;;  %v2582_v18 = vadd.f32 %v2696_v20, %v2581_v31 }
0x166a   :  { %v3108_v1 = vpop.f32.mrf.mxu1 }
0x166b   :  { %2620 = vst [vmem:[%s4355_s10] sm:$0xff] %v2582_v18  ;;  %v2597_v27 = vadd.f32 %v3108_v1, %v2696_v20 }
0x166c   :  { %v2591_v3 = vpop.f32.mrf.mxu1 }
0x166d   :  { %2623 = vst [vmem:[%s4355_s10 + $0x18] sm:$0xff] %v2597_v27  ;;  %v2592_v56 = vadd.f32 %v2696_v20, %v2591_v3 }
0x166e   :  { %v3111_v2 = vpop.f32.mrf.mxu1 }
0x166f   :  { %2622 = vst [vmem:[%s4355_s10 + $0x10] sm:$0xff] %v2592_v56  ;;  %v2607_v49 = vadd.f32 %v3111_v2, %v2696_v20 }
0x1670   :  { %v2601_v55 = vpop.f32.mrf.mxu1 }
0x1671   :  { %2625 = vst [vmem:[%s4355_s10 + $0x28] sm:$0xff] %v2607_v49  ;;  %v2602_v53 = vadd.f32 %v2696_v20, %v2601_v55 }
0x1673   :  { %2624 = vst [vmem:[%s4355_s10 + $0x20] sm:$0xff] %v2602_v53 }
0x1690   :  { %v2344_v14 = vpop.permute.xlu1 %2343 }
0x1691   :  { %v2346_v7 = vadd.f32 %v2344_v14, %v2336_v57 }
0x1693   :  { %3277 = vtanh.f32 %v2346_v7 }
0x16a0   :  { %v3278_v25 = vpop.eup %3277 }
0x16a1   :  { %2349 = vrot.lane.b32.xlu0 %v3278_v25, %s3309_s1 }
0x1713   :  { %v2350_v48 = vpop.permute.xlu0 %2349 }
0x1714   :  { %v2352_v16 = vmul.f32 %v3276_v10, %v2350_v48 }
0x1716   :  { %2365 = vrot.lane.b32.xlu1 %v2352_v16, %s3311_s12 }
0x1788   :  { %v2366_v50 = vpop.permute.xlu1 %2365 }
0x1789   :  { %3097 = vmatmul.mubr.msk.f32.gmra.mxu0 %vm421_vm3, %v2366_v50 }
0x1849   :  { %v3098_v9 = vpop.f32.mrf.mxu0 }
0x184a   :  { %v2471_v41 = vadd.f32 %v3098_v9, %v4294_v5 }
0x184b   :  { %v2465_v11 = vpop.f32.mrf.mxu0 }
0x184c   :  { %v2466_v23 = vadd.f32 %v4294_v5, %v2465_v11  ;;  %v2481_v22 = vmax.f32 %v2471_v41, 0.0 }
0x184e   :  { %v2480_v46 = vmax.f32 %v2466_v23, 0.0 }
0x1850   :  { %3112 = vmatprep.mubr.msk.f32.mxu1 %vm59_vm0, %v2480_v46 }
0x1851   :  { %3113 = vmatmul.mubr.msk.f32.gmra.mxu1 %vm59_vm0, %v2481_v22 }
0x1911   :  { %v3114_v8 = vpop.f32.mrf.mxu1 }
0x1912   :  { %v2617_v26 = vadd.f32 %v3114_v8, %v2696_v20 }
0x1913   :  { %v2611_v51 = vpop.f32.mrf.mxu1 }
0x1914   :  { %2627 = vst [vmem:[%s4355_s10 + $0x38] sm:$0xff] %v2617_v26  ;;  %v2612_v28 = vadd.f32 %v2696_v20, %v2611_v51 }
0x1916   :  { %2626 = vst [vmem:[%s4355_s10 + $0x30] sm:$0xff] %v2612_v28 }

</bundles_post_ra>
